<compile_context>
chip_gen: v7x
topology: tpu7x:2x2x1
jax: 0.10.0
libtpu: 0.0.40
codegen_flags: <defaults>
</compile_context>

<pallas_src>
import functools
import numpy as np
import jax
import jax.numpy as jnp
from jax.experimental import pallas as pl
from jax.experimental.pallas import tpu as pltpu


# ----------------------------------------------------------------------------
# Fused NodeConv kernel (transposed layout: features on sublanes, nodes on lanes)
# ----------------------------------------------------------------------------
def _nodeconv_kernel(fb_ref, nb_ref,                       # scalar-prefetch (SMEM)
                     recv_ref, xT_ref, eT_ref,
                     w0x_ref, w0a_ref, b0_ref, wh_ref, bh_ref,
                     wo_ref, bo_ref, g_ref, beta_ref,
                     out_ref, agg_ref,
                     *, n_layers, layer_norm, tile_n, n_valid):
    i = pl.program_id(0)                                   # node-tile axis ("parallel")
    j = pl.program_id(1)                                   # edge-block axis ("arbitrary")

    @pl.when(j == 0)
    def _init():
        agg_ref[...] = jnp.zeros_like(agg_ref)

    # ---- scatter-sum contribution of this edge block (skip steps past this tile's span)
    @pl.when(j < nb_ref[i])
    def _accumulate():
        base = i * tile_n
        local = recv_ref[...] - base                                    # (tile_e, 1) int32
        node_ids = jax.lax.broadcasted_iota(jnp.int32, (1, tile_n), 1)  # (1, tile_n)
        onehot_t = (local == node_ids).astype(jnp.bfloat16)             # (tile_e, tile_n)
        # (D, tile_e) @ (tile_e, tile_n) -> lane-dense (D, tile_n) f32 accumulator
        agg_ref[...] += jnp.dot(eT_ref[...], onehot_t,
                                preferred_element_type=jnp.float32)

    # ---- last edge step: MLP + GroupNorm + residual, all in transposed (C, tile_n) form
    @pl.when(j == pl.num_programs(1) - 1)
    def _finalize():
        xT = xT_ref[...]                                                # (D, tile_n) f32
        # first linear on [x, agg] as two partial matmuls (no concat); agg cast f32->bf16
        h = jnp.dot(w0x_ref[...], xT.astype(jnp.bfloat16),
                    preferred_element_type=jnp.float32)
        h += jnp.dot(w0a_ref[...], agg_ref[...].astype(jnp.bfloat16),
                     preferred_element_type=jnp.float32)
        h = jnp.maximum(h + b0_ref[...], 0.0)                           # (H, tile_n)
        for k in range(n_layers):                                       # static python loop
            h = jnp.dot(wh_ref[k], h.astype(jnp.bfloat16),
                        preferred_element_type=jnp.float32)
            h = jnp.maximum(h + bh_ref[k], 0.0)
        y = jnp.dot(wo_ref[...], h.astype(jnp.bfloat16),
                    preferred_element_type=jnp.float32) + bo_ref[...]   # (D, tile_n)
        if layer_norm:
            # GroupNorm(1, C) == per-node normalization over the D rows (biased var, eps=1e-5)
            mean = jnp.mean(y, axis=0, keepdims=True)
            var = jnp.mean(jnp.square(y - mean), axis=0, keepdims=True)
            y = (y - mean) * jax.lax.rsqrt(var + 1e-5) * g_ref[...] + beta_ref[...]
        out = xT + y
        # zero padded node columns so the unsliced output never carries garbage rows
        col = i * tile_n + jax.lax.broadcasted_iota(jnp.int32, (1, tile_n), 1)
        out_ref[...] = jnp.where(col < n_valid, out, 0.0)


# ----------------------------------------------------------------------------
# Wrapper
# ----------------------------------------------------------------------------
def _round_up(a, m):
    return ((a + m - 1) // m) * m


def prepare_params(params):
    """One-time conversion of the f32 params to the kernel layout (transposed, bf16)."""
    out_dim = params["wo"].shape[1]
    w0 = params["w0"]
    return {
        "w0xT": w0[:out_dim].T.astype(jnp.bfloat16),                    # (H, D)
        "w0aT": w0[out_dim:].T.astype(jnp.bfloat16),                    # (H, D)
        "b0T": params["b0"].reshape(-1, 1).astype(jnp.float32),         # (H, 1)
        "whT": jnp.transpose(params["wh"], (0, 2, 1)).astype(jnp.bfloat16),  # (L, H, H)
        "bhT": jnp.transpose(params["bh"], (0, 2, 1)).astype(jnp.float32),   # (L, H, 1)
        "woT": params["wo"].T.astype(jnp.bfloat16),                     # (D, H)
        "boT": params["bo"].reshape(-1, 1).astype(jnp.float32),         # (D, 1)
        "gammaT": params["gamma"].reshape(-1, 1).astype(jnp.float32),   # (D, 1)
        "betaT": params["beta"].reshape(-1, 1).astype(jnp.float32),     # (D, 1)
    }


def node_conv_forward(x, edge_index, e, kparams, *, layer_norm=True, aggr="sum",
                      tile_n=1024, tile_e=512, vmem_limit_bytes=48 * 1024 * 1024):
    if aggr != "sum":
        # TODO(synk): mean/max aggregation not implemented
        raise NotImplementedError("only aggr='sum' is implemented")

    N, D = x.shape
    E = e.shape[0]
    H = kparams["w0xT"].shape[0]
    L = kparams["whT"].shape[0]

    # tiles: multiples of 128 (nodes & edges both live on a lane axis somewhere),
    # clamped to the padded problem size.  On v7x prefer tile_n with n_pad/tile_n even.
    tile_n = _round_up(min(tile_n, _round_up(N, 128)), 128)
    tile_e = _round_up(min(tile_e, _round_up(E, 128)), 128)
    n_pad = _round_up(N, tile_n)
    e_pad = _round_up(E, tile_e)
    n_tiles = n_pad // tile_n
    num_e_blocks = e_pad // tile_e

    # ---- sort edges by receiver once; pad with sentinel n_pad (never matches a node) ----
    recv = edge_index[1].astype(jnp.int32)
    order = jnp.argsort(recv)
    recv_s = recv[order]
    e_s = e[order].astype(jnp.bfloat16)
    if e_pad != E:
        recv_s = jnp.concatenate(
            [recv_s, jnp.full((e_pad - E,), n_pad, jnp.int32)])
        e_s = jnp.pad(e_s, ((0, e_pad - E), (0, 0)))
    eT = e_s.T                                                  # (D, e_pad) bf16
    recv_col = recv_s.reshape(e_pad, 1)                         # (e_pad, 1) int32

    xT = x.T                                                    # (D, N) f32
    if n_pad != N:
        xT = jnp.pad(xT, ((0, 0), (0, n_pad - N)))

    # ---- per-node-tile contiguous edge-block ranges in the sorted order ----
    bounds = jnp.arange(n_tiles + 1, dtype=jnp.int32) * tile_n
    pos = jnp.searchsorted(recv_s, bounds, side="left").astype(jnp.int32)
    start, end = pos[:-1], pos[1:]
    first_block = jnp.minimum(start // tile_e, num_e_blocks - 1).astype(jnp.int32)
    last_block = (end + tile_e - 1) // tile_e
    num_blocks = jnp.maximum(last_block - first_block, 1).astype(jnp.int32)

    # data-dependent edge-axis extent (wrapper runs eagerly; under jit pass a static bound)
    max_blocks = int(jax.device_get(jnp.max(num_blocks)))

    kernel = functools.partial(_nodeconv_kernel, n_layers=L,
                               layer_norm=layer_norm, tile_n=tile_n, n_valid=N)

    def _eblk(i, j, fb, nb):
        # clamp past-the-span steps to the last valid block -> same block index -> no re-DMA
        return fb[i] + jnp.minimum(j, nb[i] - 1)

    grid_spec = pltpu.PrefetchScalarGridSpec(
        num_scalar_prefetch=2,
        grid=(n_tiles, max_blocks),
        in_specs=[
            pl.BlockSpec((tile_e, 1), lambda i, j, fb, nb: (_eblk(i, j, fb, nb), 0)),  # recv
            pl.BlockSpec((D, tile_n), lambda i, j, fb, nb: (0, i)),                    # x^T
            pl.BlockSpec((D, tile_e), lambda i, j, fb, nb: (0, _eblk(i, j, fb, nb))),  # e^T
            pl.BlockSpec((H, D), lambda i, j, fb, nb: (0, 0)),                         # w0x^T
            pl.BlockSpec((H, D), lambda i, j, fb, nb: (0, 0)),                         # w0a^T
            pl.BlockSpec((H, 1), lambda i, j, fb, nb: (0, 0)),                         # b0
            pl.BlockSpec((L, H, H), lambda i, j, fb, nb: (0, 0, 0)),                   # wh^T
            pl.BlockSpec((L, H, 1), lambda i, j, fb, nb: (0, 0, 0)),                   # bh
            pl.BlockSpec((D, H), lambda i, j, fb, nb: (0, 0)),                         # wo^T
            pl.BlockSpec((D, 1), lambda i, j, fb, nb: (0, 0)),                         # bo
            pl.BlockSpec((D, 1), lambda i, j, fb, nb: (0, 0)),                         # gamma
            pl.BlockSpec((D, 1), lambda i, j, fb, nb: (0, 0)),                         # beta
        ],
        out_specs=pl.BlockSpec((D, tile_n), lambda i, j, fb, nb: (0, i)),
        scratch_shapes=[pltpu.VMEM((D, tile_n), jnp.float32)],          # agg^T accumulator
    )

    # advisory cost estimate (each edge block visited ~once + one boundary block / node tile)
    approx_steps = num_e_blocks + n_tiles
    flops = (2 * D * tile_n * tile_e * approx_steps
             + 2 * n_pad * (2 * D * H + L * H * H + H * D))
    bytes_accessed = (4 * N * D * 2 + 2 * E * D + 4 * E
                      + 2 * (2 * D * H + L * H * H + H * D))
    cost = pl.CostEstimate(flops=int(flops), transcendentals=int(n_pad),
                           bytes_accessed=int(bytes_accessed))

    outT = pl.pallas_call(
        kernel,
        out_shape=jax.ShapeDtypeStruct((D, n_pad), jnp.float32),
        grid_spec=grid_spec,
        compiler_params=pltpu.CompilerParams(
            dimension_semantics=("parallel", "arbitrary"),
            # headroom above the default scoped limit (16 MiB on v5e, 32 MiB v6e/v7x);
            # stays below v7x's 64 MiB physical VMEM.
            vmem_limit_bytes=vmem_limit_bytes),
        cost_estimate=cost,
    )(first_block, num_blocks, recv_col, xT, eT,
      kparams["w0xT"], kparams["w0aT"], kparams["b0T"],
      kparams["whT"], kparams["bhT"], kparams["woT"], kparams["boT"],
      kparams["gammaT"], kparams["betaT"])

    return outT[:, :N].T                                        # back to (N, D)


# ----------------------------------------------------------------------------
# Deterministic parameter initialization (mirrors torch.nn.Linear default init)
# ----------------------------------------------------------------------------
def _init_linear(key, fan_in, fan_out):
    k1, k2 = jax.random.split(key)
    bound = 1.0 / np.sqrt(fan_in)
    w = jax.random.uniform(k1, (fan_in, fan_out), jnp.float32, -bound, bound)
    b = jax.random.uniform(k2, (1, fan_out), jnp.float32, -bound, bound)
    return w, b


def init_node_conv(key, in_dim, h_dim, out_dim, n_layers):
    assert in_dim == out_dim, "residual connection requires in_dim == out_dim"
    keys = jax.random.split(key, n_layers + 2)
    w0, b0 = _init_linear(keys[0], 2 * in_dim, h_dim)
    whs, bhs = [], []
    for k in range(n_layers):
        w, b = _init_linear(keys[1 + k], h_dim, h_dim)
        whs.append(w)
        bhs.append(b)
    wo, bo = _init_linear(keys[-1], h_dim, out_dim)
    return {
        "w0": w0, "b0": b0,                       # (2D, H), (1, H)
        "wh": jnp.stack(whs, axis=0),             # (L, H, H)
        "bh": jnp.stack(bhs, axis=0),             # (L, 1, H)
        "wo": wo, "bo": bo,                       # (H, D), (1, D)
        "gamma": jnp.ones((1, out_dim), jnp.float32),   # GroupNorm weight
        "beta": jnp.zeros((1, out_dim), jnp.float32),   # GroupNorm bias
    }


# ----------------------------------------------------------------------------
# Pure-JAX f32 reference
# ----------------------------------------------------------------------------
def _node_conv_ref(x, edge_index, e, p, layer_norm):
    receivers = edge_index[1]
    agg = jax.ops.segment_sum(e, receivers, num_segments=x.shape[0])
    inp = jnp.concatenate([x, agg], axis=1)
    h = jnp.maximum(inp @ p["w0"] + p["b0"][0], 0.0)
    for k in range(p["wh"].shape[0]):
        h = jnp.maximum(h @ p["wh"][k] + p["bh"][k, 0], 0.0)
    y = h @ p["wo"] + p["bo"][0]
    if layer_norm:
        mean = y.mean(-1, keepdims=True)
        var = ((y - mean) ** 2).mean(-1, keepdims=True)
        y = (y - mean) / jnp.sqrt(var + 1e-5) * p["gamma"][0] + p["beta"][0]
    return x + y


# ----------------------------------------------------------------------------
if __name__ == "__main__":
    N_NODES, N_EDGES = 200, 600          # deliberately NOT multiples of the tiles
    IN_DIM = OUT_DIM = 32
    H_DIM = 64
    N_LAYERS = 2
    LAYER_NORM = True                    # GroupNorm(1, out_dim) -> per-row layer norm
    AGGR = "sum"

    key = jax.random.PRNGKey(0)
    kx, ke, ks, kr, kp = jax.random.split(key, 5)
    x = jax.random.normal(kx, (N_NODES, IN_DIM), jnp.float32)
    e = jax.random.normal(ke, (N_EDGES, IN_DIM), jnp.float32)
    senders = jax.random.randint(ks, (N_EDGES,), 0, N_NODES, jnp.int32)   # unused by NodeConv
    receivers = jax.random.randint(kr, (N_EDGES,), 0, N_NODES, jnp.int32)
    edge_index = jnp.stack([senders, receivers], axis=0)

    params = init_node_conv(kp, IN_DIM, H_DIM, OUT_DIM, N_LAYERS)
    kparams = prepare_params(params)     # bf16 / transposed weights, converted once

    # small tiles here so the demo exercises multiple node tiles, multiple edge blocks
    # and the padding path; production graphs use the larger defaults and should be
    # timed with xprof, not this configuration.
    x_new = node_conv_forward(x, edge_index, e, kparams,
                              layer_norm=LAYER_NORM, aggr=AGGR,
                              tile_n=128, tile_e=256)
    jax.block_until_ready(x_new)

    # correctness check vs. a pure-f32 reference (kernel matmuls run bf16 on the MXU
    # with f32 accumulation, hence the relaxed tolerance)
    x_ref = _node_conv_ref(x, edge_index, e, params, LAYER_NORM)
    max_err = float(jnp.max(jnp.abs(x_new - x_ref)))
    assert jnp.allclose(x_new, x_ref, atol=3e-2, rtol=3e-2), \
        f"node features mismatch (max abs err {max_err})"

    print("KERNEL_OK")
</pallas_src>

<mosaic_0001>
module attributes {stable_mosaic.version = 11 : i64} {
  func.func @_nodeconv_kernel(%arg0: i32, %arg1: i32, %arg2: memref<2xi32, #tpu.memory_space<smem>>, %arg3: memref<2xi32, #tpu.memory_space<smem>>, %arg4: memref<256x1xi32, #tpu.memory_space<vmem>>, %arg5: memref<32x128xf32, #tpu.memory_space<vmem>>, %arg6: memref<32x256xbf16, #tpu.memory_space<vmem>>, %arg7: memref<64x32xbf16, #tpu.memory_space<vmem>>, %arg8: memref<64x32xbf16, #tpu.memory_space<vmem>>, %arg9: memref<64x1xf32, #tpu.memory_space<vmem>>, %arg10: memref<2x64x64xbf16, #tpu.memory_space<vmem>>, %arg11: memref<2x64x1xf32, #tpu.memory_space<vmem>>, %arg12: memref<32x64xbf16, #tpu.memory_space<vmem>>, %arg13: memref<32x1xf32, #tpu.memory_space<vmem>>, %arg14: memref<32x1xf32, #tpu.memory_space<vmem>>, %arg15: memref<32x1xf32, #tpu.memory_space<vmem>>, %arg16: memref<32x128xf32, #tpu.memory_space<vmem>>, %arg17: memref<32x128xf32, #tpu.memory_space<vmem>>) attributes {dimension_semantics = [#tpu.dimension_semantics<parallel>, #tpu.dimension_semantics<arbitrary>], iteration_bounds = array<i64: 2, 2>, scalar_prefetch = 2 : i64, scratch_operands = 1 : i64, tpu.core_type = #tpu.core_type<tc>, window_params = [{transform_indices = @transform_0, window_bounds = array<i64: 256, 1>}, {transform_indices = @transform_1, window_bounds = array<i64: 32, 128>}, {transform_indices = @transform_2, window_bounds = array<i64: 32, 256>}, {pipeline_mode = #tpu.pipeline_mode<synchronous>, transform_indices = @transform_3, window_bounds = array<i64: 64, 32>}, {pipeline_mode = #tpu.pipeline_mode<synchronous>, transform_indices = @transform_4, window_bounds = array<i64: 64, 32>}, {pipeline_mode = #tpu.pipeline_mode<synchronous>, transform_indices = @transform_5, window_bounds = array<i64: 64, 1>}, {pipeline_mode = #tpu.pipeline_mode<synchronous>, transform_indices = @transform_6, window_bounds = array<i64: 2, 64, 64>}, {pipeline_mode = #tpu.pipeline_mode<synchronous>, transform_indices = @transform_7, window_bounds = array<i64: 2, 64, 1>}, {pipeline_mode = #tpu.pipeline_mode<synchronous>, transform_indices = @transform_8, window_bounds = array<i64: 32, 64>}, {pipeline_mode = #tpu.pipeline_mode<synchronous>, transform_indices = @transform_9, window_bounds = array<i64: 32, 1>}, {pipeline_mode = #tpu.pipeline_mode<synchronous>, transform_indices = @transform_10, window_bounds = array<i64: 32, 1>}, {pipeline_mode = #tpu.pipeline_mode<synchronous>, transform_indices = @transform_11, window_bounds = array<i64: 32, 1>}, {transform_indices = @transform_12, window_bounds = array<i64: 32, 128>}]} {
    %c0_i32 = arith.constant 0 : i32
    %0 = arith.cmpi eq, %arg1, %c0_i32 : i32
    %1 = arith.extui %0 : i1 to i32
    %c0_i32_0 = arith.constant 0 : i32
    %2 = arith.cmpi ne, %1, %c0_i32_0 : i32
    scf.if %2 {
      %cst = arith.constant 0.000000e+00 : f32
      %11 = vector.broadcast %cst : f32 to vector<32x128xf32>
      %c0 = arith.constant 0 : index
      %c0_3 = arith.constant 0 : index
      %12 = vector.load %arg17[%c0, %c0_3] : memref<32x128xf32, #tpu.memory_space<vmem>>, vector<32x128xf32>
      tpu.vector_store %arg17[%c0, %c0_3], %11 {strides = array<i32>} : memref<32x128xf32, #tpu.memory_space<vmem>>, vector<32x128xf32>,
    } else {
    }
    %3 = arith.index_cast %arg0 : i32 to index
    %4 = memref.load %arg3[%3] : memref<2xi32, #tpu.memory_space<smem>>
    %5 = arith.cmpi slt, %arg1, %4 : i32
    %6 = arith.extui %5 : i1 to i32
    %c0_i32_1 = arith.constant 0 : i32
    %7 = arith.cmpi ne, %6, %c0_i32_1 : i32
    scf.if %7 {
      %c128_i32 = arith.constant 128 : i32
      %11 = arith.muli %arg0, %c128_i32 : i32
      %c0 = arith.constant 0 : index
      %c0_3 = arith.constant 0 : index
      %12 = vector.load %arg4[%c0, %c0_3] : memref<256x1xi32, #tpu.memory_space<vmem>>, vector<256x1xi32>
      %13 = vector.broadcast %11 : i32 to vector<256x1xi32>
      %14 = arith.subi %12, %13 : vector<256x1xi32>
      %15 = tpu.iota {dimensions = array<i32: 1>} : vector<1x128xi32>
      %16 = vector.broadcast %14 : vector<256x1xi32> to vector<256x128xi32>
      %17 = vector.broadcast %15 : vector<1x128xi32> to vector<256x128xi32>
      %18 = arith.cmpi eq, %16, %17 : vector<256x128xi32>
      %19 = arith.extui %18 : vector<256x128xi1> to vector<256x128xi32>
      %20 = arith.sitofp %19 : vector<256x128xi32> to vector<256x128xf32>
      %21 = arith.truncf %20 : vector<256x128xf32> to vector<256x128xbf16>
      %c0_4 = arith.constant 0 : index
      %c0_5 = arith.constant 0 : index
      %22 = vector.load %arg17[%c0_4, %c0_5] : memref<32x128xf32, #tpu.memory_space<vmem>>, vector<32x128xf32>
      %c0_6 = arith.constant 0 : index
      %c0_7 = arith.constant 0 : index
      %23 = vector.load %arg6[%c0_6, %c0_7] : memref<32x256xbf16, #tpu.memory_space<vmem>>, vector<32x256xbf16>
      %cst = arith.constant dense<0.000000e+00> : vector<32x128xf32>
      %24 = tpu.matmul %23, %21, %cst {dimension_numbers = #tpu.dot_dimension_numbers<[1], [0], [0], [1], [0, 0, 1, 1], [], []>} : vector<32x256xbf16>, vector<256x128xbf16>, vector<32x128xf32> -> vector<32x128xf32>
      %25 = arith.addf %22, %24 : vector<32x128xf32>
      %c0_8 = arith.constant 0 : index
      %c0_9 = arith.constant 0 : index
      %26 = vector.load %arg17[%c0_8, %c0_9] : memref<32x128xf32, #tpu.memory_space<vmem>>, vector<32x128xf32>
      tpu.vector_store %arg17[%c0_8, %c0_9], %25 {strides = array<i32>} : memref<32x128xf32, #tpu.memory_space<vmem>>, vector<32x128xf32>,
    } else {
    }
    %c1_i32 = arith.constant 1 : i32
    %8 = arith.cmpi eq, %arg1, %c1_i32 : i32
    %9 = arith.extui %8 : i1 to i32
    %c0_i32_2 = arith.constant 0 : i32
    %10 = arith.cmpi ne, %9, %c0_i32_2 : i32
    scf.if %10 {
      %c0 = arith.constant 0 : index
      %c0_3 = arith.constant 0 : index
      %11 = vector.load %arg5[%c0, %c0_3] : memref<32x128xf32, #tpu.memory_space<vmem>>, vector<32x128xf32>
      %c0_4 = arith.constant 0 : index
      %c0_5 = arith.constant 0 : index
      %12 = vector.load %arg7[%c0_4, %c0_5] : memref<64x32xbf16, #tpu.memory_space<vmem>>, vector<64x32xbf16>
      %13 = arith.truncf %11 : vector<32x128xf32> to vector<32x128xbf16>
      %cst = arith.constant dense<0.000000e+00> : vector<64x128xf32>
      %14 = tpu.matmul %12, %13, %cst {dimension_numbers = #tpu.dot_dimension_numbers<[1], [0], [0], [1], [0, 0, 1, 1], [], []>} : vector<64x32xbf16>, vector<32x128xbf16>, vector<64x128xf32> -> vector<64x128xf32>
      %c0_6 = arith.constant 0 : index
      %c0_7 = arith.constant 0 : index
      %15 = vector.load %arg8[%c0_6, %c0_7] : memref<64x32xbf16, #tpu.memory_space<vmem>>, vector<64x32xbf16>
      %c0_8 = arith.constant 0 : index
      %c0_9 = arith.constant 0 : index
      %16 = vector.load %arg17[%c0_8, %c0_9] : memref<32x128xf32, #tpu.memory_space<vmem>>, vector<32x128xf32>
      %17 = arith.truncf %16 : vector<32x128xf32> to vector<32x128xbf16>
      %cst_10 = arith.constant dense<0.000000e+00> : vector<64x128xf32>
      %18 = tpu.matmul %15, %17, %cst_10 {dimension_numbers = #tpu.dot_dimension_numbers<[1], [0], [0], [1], [0, 0, 1, 1], [], []>} : vector<64x32xbf16>, vector<32x128xbf16>, vector<64x128xf32> -> vector<64x128xf32>
      %19 = arith.addf %14, %18 : vector<64x128xf32>
      %c0_11 = arith.constant 0 : index
      %c0_12 = arith.constant 0 : index
      %20 = vector.load %arg9[%c0_11, %c0_12] : memref<64x1xf32, #tpu.memory_space<vmem>>, vector<64x1xf32>
      %21 = vector.broadcast %20 : vector<64x1xf32> to vector<64x128xf32>
      %22 = arith.addf %19, %21 : vector<64x128xf32>
      %cst_13 = arith.constant 0.000000e+00 : f32
      %23 = vector.broadcast %cst_13 : f32 to vector<64x128xf32>
      %24 = arith.maximumf %22, %23 : vector<64x128xf32>
      %c0_14 = arith.constant 0 : index
      %c0_15 = arith.constant 0 : index
      %c0_16 = arith.constant 0 : index
      %25 = vector.load %arg10[%c0_14, %c0_15, %c0_16] : memref<2x64x64xbf16, #tpu.memory_space<vmem>>, vector<1x64x64xbf16>
      %26 = vector.shape_cast %25 : vector<1x64x64xbf16> to vector<64x64xbf16>
      %27 = arith.truncf %24 : vector<64x128xf32> to vector<64x128xbf16>
      %cst_17 = arith.constant dense<0.000000e+00> : vector<64x128xf32>
      %28 = tpu.matmul %26, %27, %cst_17 {dimension_numbers = #tpu.dot_dimension_numbers<[1], [0], [0], [1], [0, 0, 1, 1], [], []>} : vector<64x64xbf16>, vector<64x128xbf16>, vector<64x128xf32> -> vector<64x128xf32>
      %c0_18 = arith.constant 0 : index
      %c0_19 = arith.constant 0 : index
      %c0_20 = arith.constant 0 : index
      %29 = vector.load %arg11[%c0_18, %c0_19, %c0_20] : memref<2x64x1xf32, #tpu.memory_space<vmem>>, vector<1x64x1xf32>
      %30 = vector.shape_cast %29 : vector<1x64x1xf32> to vector<64x1xf32>
      %31 = vector.broadcast %30 : vector<64x1xf32> to vector<64x128xf32>
      %32 = arith.addf %28, %31 : vector<64x128xf32>
      %cst_21 = arith.constant 0.000000e+00 : f32
      %33 = vector.broadcast %cst_21 : f32 to vector<64x128xf32>
      %34 = arith.maximumf %32, %33 : vector<64x128xf32>
      %c1 = arith.constant 1 : index
      %c0_22 = arith.constant 0 : index
      %c0_23 = arith.constant 0 : index
      %35 = vector.load %arg10[%c1, %c0_22, %c0_23] : memref<2x64x64xbf16, #tpu.memory_space<vmem>>, vector<1x64x64xbf16>
      %36 = vector.shape_cast %35 : vector<1x64x64xbf16> to vector<64x64xbf16>
      %37 = arith.truncf %34 : vector<64x128xf32> to vector<64x128xbf16>
      %cst_24 = arith.constant dense<0.000000e+00> : vector<64x128xf32>
      %38 = tpu.matmul %36, %37, %cst_24 {dimension_numbers = #tpu.dot_dimension_numbers<[1], [0], [0], [1], [0, 0, 1, 1], [], []>} : vector<64x64xbf16>, vector<64x128xbf16>, vector<64x128xf32> -> vector<64x128xf32>
      %c1_25 = arith.constant 1 : index
      %c0_26 = arith.constant 0 : index
      %c0_27 = arith.constant 0 : index
      %39 = vector.load %arg11[%c1_25, %c0_26, %c0_27] : memref<2x64x1xf32, #tpu.memory_space<vmem>>, vector<1x64x1xf32>
      %40 = vector.shape_cast %39 : vector<1x64x1xf32> to vector<64x1xf32>
      %41 = vector.broadcast %40 : vector<64x1xf32> to vector<64x128xf32>
      %42 = arith.addf %38, %41 : vector<64x128xf32>
      %cst_28 = arith.constant 0.000000e+00 : f32
      %43 = vector.broadcast %cst_28 : f32 to vector<64x128xf32>
      %44 = arith.maximumf %42, %43 : vector<64x128xf32>
      %c0_29 = arith.constant 0 : index
      %c0_30 = arith.constant 0 : index
      %45 = vector.load %arg12[%c0_29, %c0_30] : memref<32x64xbf16, #tpu.memory_space<vmem>>, vector<32x64xbf16>
      %46 = arith.truncf %44 : vector<64x128xf32> to vector<64x128xbf16>
      %cst_31 = arith.constant dense<0.000000e+00> : vector<32x128xf32>
      %47 = tpu.matmul %45, %46, %cst_31 {dimension_numbers = #tpu.dot_dimension_numbers<[1], [0], [0], [1], [0, 0, 1, 1], [], []>} : vector<32x64xbf16>, vector<64x128xbf16>, vector<32x128xf32> -> vector<32x128xf32>
      %c0_32 = arith.constant 0 : index
      %c0_33 = arith.constant 0 : index
      %48 = vector.load %arg13[%c0_32, %c0_33] : memref<32x1xf32, #tpu.memory_space<vmem>>, vector<32x1xf32>
      %49 = vector.broadcast %48 : vector<32x1xf32> to vector<32x128xf32>
      %50 = arith.addf %47, %49 : vector<32x128xf32>
      %cst_34 = arith.constant dense<0.000000e+00> : vector<128xf32>
      %51 = vector.multi_reduction <add>, %50, %cst_34 [0] : vector<32x128xf32> to vector<128xf32>
      %52 = vector.shape_cast %51 : vector<128xf32> to vector<1x128xf32>
      %cst_35 = arith.constant 3.200000e+01 : f32
      %53 = vector.broadcast %cst_35 : f32 to vector<1x128xf32>
      %54 = arith.divf %52, %53 : vector<1x128xf32>
      %55 = vector.broadcast %54 : vector<1x128xf32> to vector<32x128xf32>
      %56 = arith.subf %50, %55 : vector<32x128xf32>
      %57 = arith.mulf %56, %56 : vector<32x128xf32>
      %cst_36 = arith.constant dense<0.000000e+00> : vector<128xf32>
      %58 = vector.multi_reduction <add>, %57, %cst_36 [0] : vector<32x128xf32> to vector<128xf32>
      %59 = vector.shape_cast %58 : vector<128xf32> to vector<1x128xf32>
      %cst_37 = arith.constant 3.200000e+01 : f32
      %60 = vector.broadcast %cst_37 : f32 to vector<1x128xf32>
      %61 = arith.divf %59, %60 : vector<1x128xf32>
      %62 = vector.broadcast %54 : vector<1x128xf32> to vector<32x128xf32>
      %63 = arith.subf %50, %62 : vector<32x128xf32>
      %cst_38 = arith.constant 9.99999974E-6 : f32
      %64 = vector.broadcast %cst_38 : f32 to vector<1x128xf32>
      %65 = arith.addf %61, %64 : vector<1x128xf32>
      %66 = math.rsqrt %65 : vector<1x128xf32>
      %67 = vector.broadcast %66 : vector<1x128xf32> to vector<32x128xf32>
      %68 = arith.mulf %63, %67 : vector<32x128xf32>
      %c0_39 = arith.constant 0 : index
      %c0_40 = arith.constant 0 : index
      %69 = vector.load %arg14[%c0_39, %c0_40] : memref<32x1xf32, #tpu.memory_space<vmem>>, vector<32x1xf32>
      %70 = vector.broadcast %69 : vector<32x1xf32> to vector<32x128xf32>
      %71 = arith.mulf %68, %70 : vector<32x128xf32>
      %c0_41 = arith.constant 0 : index
      %c0_42 = arith.constant 0 : index
      %72 = vector.load %arg15[%c0_41, %c0_42] : memref<32x1xf32, #tpu.memory_space<vmem>>, vector<32x1xf32>
      %73 = vector.broadcast %72 : vector<32x1xf32> to vector<32x128xf32>
      %74 = arith.addf %71, %73 : vector<32x128xf32>
      %75 = arith.addf %11, %74 : vector<32x128xf32>
      %c128_i32 = arith.constant 128 : i32
      %76 = arith.muli %arg0, %c128_i32 : i32
      %77 = tpu.iota {dimensions = array<i32: 1>} : vector<1x128xi32>
      %78 = vector.broadcast %76 : i32 to vector<1x128xi32>
      %79 = arith.addi %78, %77 : vector<1x128xi32>
      %c200_i32 = arith.constant 200 : i32
      %80 = vector.broadcast %c200_i32 : i32 to vector<1x128xi32>
      %81 = arith.cmpi slt, %79, %80 : vector<1x128xi32>
      %cst_43 = arith.constant 0.000000e+00 : f32
      %82 = vector.shape_cast %81 : vector<1x128xi1> to vector<1x128xi1>
      %83 = vector.broadcast %82 : vector<1x128xi1> to vector<32x128xi1>
      %84 = vector.broadcast %cst_43 : f32 to vector<32x128xf32>
      %85 = arith.select %83, %75, %84 : vector<32x128xi1>, vector<32x128xf32>
      %c0_44 = arith.constant 0 : index
      %c0_45 = arith.constant 0 : index
      %86 = vector.load %arg16[%c0_44, %c0_45] : memref<32x128xf32, #tpu.memory_space<vmem>>, vector<32x128xf32>
      tpu.vector_store %arg16[%c0_44, %c0_45], %85 {strides = array<i32>} : memref<32x128xf32, #tpu.memory_space<vmem>>, vector<32x128xf32>,
    } else {
    }
    return
  }
  func.func @transform_0(%arg0: i32, %arg1: i32, %arg2: memref<2xi32, #tpu.memory_space<smem>>, %arg3: memref<2xi32, #tpu.memory_space<smem>>) -> (i32, i32) {
    %0 = arith.index_cast %arg0 : i32 to index
    %1 = memref.load %arg2[%0] : memref<2xi32, #tpu.memory_space<smem>>
    %2 = arith.index_cast %arg0 : i32 to index
    %3 = memref.load %arg3[%2] : memref<2xi32, #tpu.memory_space<smem>>
    %c1_i32 = arith.constant 1 : i32
    %4 = arith.subi %3, %c1_i32 : i32
    %5 = arith.minsi %arg1, %4 : i32
    %6 = arith.addi %1, %5 : i32
    %c0_i32 = arith.constant 0 : i32
    %c0_i32_0 = arith.constant 0 : i32
    return %6, %c0_i32 : i32, i32
  }
  func.func @transform_1(%arg0: i32, %arg1: i32, %arg2: memref<2xi32, #tpu.memory_space<smem>>, %arg3: memref<2xi32, #tpu.memory_space<smem>>) -> (i32, i32) {
    %c0_i32 = arith.constant 0 : i32
    %c0_i32_0 = arith.constant 0 : i32
    return %c0_i32, %arg0 : i32, i32
  }
  func.func @transform_2(%arg0: i32, %arg1: i32, %arg2: memref<2xi32, #tpu.memory_space<smem>>, %arg3: memref<2xi32, #tpu.memory_space<smem>>) -> (i32, i32) {
    %0 = arith.index_cast %arg0 : i32 to index
    %1 = memref.load %arg2[%0] : memref<2xi32, #tpu.memory_space<smem>>
    %2 = arith.index_cast %arg0 : i32 to index
    %3 = memref.load %arg3[%2] : memref<2xi32, #tpu.memory_space<smem>>
    %c1_i32 = arith.constant 1 : i32
    %4 = arith.subi %3, %c1_i32 : i32
    %5 = arith.minsi %arg1, %4 : i32
    %6 = arith.addi %1, %5 : i32
    %c0_i32 = arith.constant 0 : i32
    %c0_i32_0 = arith.constant 0 : i32
    return %c0_i32, %6 : i32, i32
  }
  func.func @transform_3(%arg0: i32, %arg1: i32, %arg2: memref<2xi32, #tpu.memory_space<smem>>, %arg3: memref<2xi32, #tpu.memory_space<smem>>) -> (i32, i32) {
    %c0_i32 = arith.constant 0 : i32
    %c0_i32_0 = arith.constant 0 : i32
    %c0_i32_1 = arith.constant 0 : i32
    return %c0_i32, %c0_i32_0 : i32, i32
  }
  func.func @transform_4(%arg0: i32, %arg1: i32, %arg2: memref<2xi32, #tpu.memory_space<smem>>, %arg3: memref<2xi32, #tpu.memory_space<smem>>) -> (i32, i32) {
    %c0_i32 = arith.constant 0 : i32
    %c0_i32_0 = arith.constant 0 : i32
    %c0_i32_1 = arith.constant 0 : i32
    return %c0_i32, %c0_i32_0 : i32, i32
  }
  func.func @transform_5(%arg0: i32, %arg1: i32, %arg2: memref<2xi32, #tpu.memory_space<smem>>, %arg3: memref<2xi32, #tpu.memory_space<smem>>) -> (i32, i32) {
    %c0_i32 = arith.constant 0 : i32
    %c0_i32_0 = arith.constant 0 : i32
    %c0_i32_1 = arith.constant 0 : i32
    return %c0_i32, %c0_i32_0 : i32, i32
  }
  func.func @transform_6(%arg0: i32, %arg1: i32, %arg2: memref<2xi32, #tpu.memory_space<smem>>, %arg3: memref<2xi32, #tpu.memory_space<smem>>) -> (i32, i32, i32) {
    %c0_i32 = arith.constant 0 : i32
    %c0_i32_0 = arith.constant 0 : i32
    %c0_i32_1 = arith.constant 0 : i32
    %c0_i32_2 = arith.constant 0 : i32
    return %c0_i32, %c0_i32_0, %c0_i32_1 : i32, i32, i32
  }
  func.func @transform_7(%arg0: i32, %arg1: i32, %arg2: memref<2xi32, #tpu.memory_space<smem>>, %arg3: memref<2xi32, #tpu.memory_space<smem>>) -> (i32, i32, i32) {
    %c0_i32 = arith.constant 0 : i32
    %c0_i32_0 = arith.constant 0 : i32
    %c0_i32_1 = arith.constant 0 : i32
    %c0_i32_2 = arith.constant 0 : i32
    return %c0_i32, %c0_i32_0, %c0_i32_1 : i32, i32, i32
  }
  func.func @transform_8(%arg0: i32, %arg1: i32, %arg2: memref<2xi32, #tpu.memory_space<smem>>, %arg3: memref<2xi32, #tpu.memory_space<smem>>) -> (i32, i32) {
    %c0_i32 = arith.constant 0 : i32
    %c0_i32_0 = arith.constant 0 : i32
    %c0_i32_1 = arith.constant 0 : i32
    return %c0_i32, %c0_i32_0 : i32, i32
  }
  func.func @transform_9(%arg0: i32, %arg1: i32, %arg2: memref<2xi32, #tpu.memory_space<smem>>, %arg3: memref<2xi32, #tpu.memory_space<smem>>) -> (i32, i32) {
    %c0_i32 = arith.constant 0 : i32
    %c0_i32_0 = arith.constant 0 : i32
    %c0_i32_1 = arith.constant 0 : i32
    return %c0_i32, %c0_i32_0 : i32, i32
  }
  func.func @transform_10(%arg0: i32, %arg1: i32, %arg2: memref<2xi32, #tpu.memory_space<smem>>, %arg3: memref<2xi32, #tpu.memory_space<smem>>) -> (i32, i32) {
    %c0_i32 = arith.constant 0 : i32
    %c0_i32_0 = arith.constant 0 : i32
    %c0_i32_1 = arith.constant 0 : i32
    return %c0_i32, %c0_i32_0 : i32, i32
  }
  func.func @transform_11(%arg0: i32, %arg1: i32, %arg2: memref<2xi32, #tpu.memory_space<smem>>, %arg3: memref<2xi32, #tpu.memory_space<smem>>) -> (i32, i32) {
    %c0_i32 = arith.constant 0 : i32
    %c0_i32_0 = arith.constant 0 : i32
    %c0_i32_1 = arith.constant 0 : i32
    return %c0_i32, %c0_i32_0 : i32, i32
  }
  func.func @transform_12(%arg0: i32, %arg1: i32, %arg2: memref<2xi32, #tpu.memory_space<smem>>, %arg3: memref<2xi32, #tpu.memory_space<smem>>) -> (i32, i32) {
    %c0_i32 = arith.constant 0 : i32
    %c0_i32_0 = arith.constant 0 : i32
    return %c0_i32, %arg0 : i32, i32
  }
}

</mosaic_0001>

<bundles_post_ra>
// kernel: tpu_custom_call.1
= control target key start
LH: loop header
LB: loop body
LE: loop exit
PB: predicated region body
PF: predicated region fallthrough
CT: control target
= control target key end

     0   :  { %s3188_s0 = inlined_call_operand.vmem [shape: s32[2], index: 0, kind: input, shape index: {}]   ;;  %s3189_s2 = inlined_call_operand.vmem [shape: s32[768,1], index: 2, kind: input, shape index: {}]   ;;  %s3190_s3 = inlined_call_operand.vmem [shape: f32[32,256], index: 3, kind: input, shape index: {}]   ;;  %s3191_s4 = inlined_call_operand.vmem [shape: bf16[32,768], index: 4, kind: input, shape index: {}]   ;;  %s3192_s5 = inlined_call_operand.vmem [shape: bf16[64,32], index: 5, kind: input, shape index: {}]   ;;  %s3193_s6 = inlined_call_operand.vmem [shape: bf16[64,32], index: 6, kind: input, shape index: {}]   ;;  %s3194_s7 = inlined_call_operand.vmem [shape: f32[64,1], index: 7, kind: input, shape index: {}]   ;;  %s3195_s8 = inlined_call_operand.vmem [shape: bf16[2,64,64], index: 8, kind: input, shape index: {}]   ;;  %s3196_s9 = inlined_call_operand.vmem [shape: f32[2,64,1], index: 9, kind: input, shape index: {}]   ;;  %s3197_s10 = inlined_call_operand.vmem [shape: bf16[32,64], index: 10, kind: input, shape index: {}]   ;;  %s3198_s11 = inlined_call_operand.vmem [shape: f32[32,1], index: 11, kind: input, shape index: {}]   ;;  %s3199_s12 = inlined_call_operand.vmem [shape: f32[32,1], index: 12, kind: input, shape index: {}]   ;;  %s3200_s13 = inlined_call_operand.vmem [shape: f32[32,1], index: 13, kind: input, shape index: {}]   ;;  %s3201_s14 = inlined_call_operand.hbm [shape: f32[32,256], index: 14, kind: output, shape index: {}]   ;;  %s3202_s1 = inlined_call_operand.vmem [shape: s32[2], index: 1, kind: input, shape index: {}]  }
   0x1   :  { %3219 = sst [smem:[#allocation14_spill]] %s3189_s2  ;;  %s19_s15 = sshll.u32 %s3188_s0, 4  ;;  %s20_s15 = int_to_ptr.vmem [resolvable:$true] %s19_s15 }
   0x2   :  { %3220 = sst [smem:[#allocation15_spill]] %s3190_s3  ;;  %s23_s18 = sshll.u32 %s3202_s1, 4  ;;  %s24_s18 = int_to_ptr.vmem [resolvable:$true] %s23_s18 }
   0x3   :  { %3221 = sst [smem:[#allocation16_spill]] %s3191_s4  ;;  %s2399_s19 = scalar_lea.vmem %s20_s15, 16 }
   0x4   :  { %3222 = sst [smem:[#allocation17_spill]] %s3192_s5  ;;  %p2400_p0 = scmp.ne.s32.totalorder %s20_s15, %s2399_s19 }
   0x5   :  { %3223 = sst [smem:[#allocation18_spill]] %s3193_s6  ;;  %p2404_p1 = scmp.lt.s32.totalorder %s20_s15, %s20_s15 }
   0x6   :  { %3224 = sst [smem:[#allocation19_spill]] %s3194_s7  ;;  %p2405_p2 = scmp.lt.s32.totalorder %s2399_s19, %s2399_s19 }
   0x7   :  { %3225 = sst [smem:[#allocation20_spill]] %s3195_s8 }
   0x8   :  { %3226 = sst [smem:[#allocation21_spill]] %s3196_s9  ;;  %p2406_p3 = por %p2405_p2, %p2404_p1 }
   0x9   :  { %3227 = sst [smem:[#allocation22_spill]] %s3197_s10 }
   0xa   :  { %3228 = sst [smem:[#allocation23_spill]] %s3198_s11  ;;  %p2407_p4 = pnand %p2406_p3, %p2400_p0 }
   0xb   :  { %3229 = sst [smem:[#allocation24_spill]] %s3199_s12 }
   0xc   :  { %3230 = sst [smem:[#allocation25_spill]] %s3200_s13 }
   0xd   :  { %3231 = sst [smem:[#allocation26_spill]] %s3201_s14 }
   0xe   :  { %2410 = shalt.err (!%p2407_p4)  }
   0xf   :  { %s2537_s20 = smov [#allocation4]   ;;  %s2411_s21 = scalar_lea.vmem %s24_s18, 16 }
  0x10   :  { %22 = dma.vmem_to_smem %s20_s15, 16, %s2537_s20, [#allocation3] }
  0x11   :  { %p2412_p5 = scmp.ne.s32.totalorder %s24_s18, %s2411_s21  ;;  %p2416_p6 = scmp.lt.s32.totalorder %s24_s18, %s24_s18 }
  0x12   :  { %p2417_p7 = scmp.lt.s32.totalorder %s2411_s21, %s2411_s21 }
  0x14   :  { %p2418_p8 = por %p2417_p7, %p2416_p6 }
  0x16   :  { %p2419_p9 = pnand %p2418_p8, %p2412_p5 }
  0x18   :  { %2422 = shalt.err (!%p2419_p9)  }
  0x19   :  { %s2538_s0 = smov [#allocation5]  }
  0x1a   :  { %26 = dma.vmem_to_smem %s24_s18, 16, %s2538_s0, [#allocation3] }
  0x1b   :  { %2491 = dma.done.wait [#allocation3], 32 }
  0x1c   :  { %2492 = vsyncadd [#allocation3], 4294967264 }
  0x1d   :  { %28 = sfence }
  0x1e   :  { %29 = vsyncpa [#allocation9], 0 }
  0x1f   :  { %31 = vsyncpa [#allocation9 + $0x1], 0  ;;  %s2628_s1 = smov 0   ;;  %s2630_s22 = smov 0  }
  0x20   :  { %s2632_s23 = smov 0   ;;  %s2634_s24 = smov 0  }
  0x21   :  { %s2636_s25 = smov 0   ;;  %s2638_s26 = smov 0  }
  0x22   :  { %s2640_s27 = smov 0   ;;  %s2642_s28 = smov 0  }
  0x23   :  { %s2644_s29 = smov 0   ;;  %s2646_s30 = smov 0  }
  0x24 LB: > { %3232 = sst [smem:[#allocation12_spill]] %s2519_s26  ;;  %s1968_s15 = sadd.s32 4294967295, %s2535_s30   ;;  %s2535_s30 = sphi %s2646_s30, %s37_s30   ;;  %s2531_s29 = sphi %s2644_s29, %s3264_s29   ;;  %s2527_s28 = sphi %s2642_s28, %s3263_s28   ;;  %s2523_s27 = sphi %s2640_s27, %s3262_s27   ;;  %s2519_s26 = sphi %s2638_s26, %s3261_s26   ;;  %s2515_s25 = sphi %s2636_s25, %s3260_s25   ;;  %s2511_s24 = sphi %s2634_s24, %s3259_s24   ;;  %s2507_s23 = sphi %s2632_s23, %s3258_s23   ;;  %s2503_s22 = sphi %s2630_s22, %s3257_s22   ;;  %s2499_s1 = sphi %s2628_s1, %s3256_s1  }
  0x25   : > { %s1969_s16 = sadd.s32 4294967294, %s2535_s30   ;;  %s46_s17 = sadd.s32 1, %s2527_s28 }
  0x26   : > { %p47_p10 = scmp.ge.s32.totalorder %s46_s17, 2  ;;  %s49_s18 = sadd.s32 1, %s2531_s29 }
  0x27   : > { %p101_p11 = scmp.ne.s32.totalorder %s2515_s25, %s2511_s24  ;;  %p102_p12 = scmp.eq.s32.totalorder %s2535_s30, 0 }
  0x28   : > { %s3266_s17 = smov (%p47_p10, %s46_s17), 0  ;;  %s3268_s18 = smov (!%p47_p10, %s49_s18), %s2531_s29 }
  0x29   : > { %s94_s19 = sadd.s32 1, %s2515_s25  ;;  %p2692_p13 = por %p102_p12, %p101_p11 }
  0x2a   : > { %p51_p0 = scmp.ge.s32.totalorder %s3268_s18, 2  ;;  %s118_s21 = sld [smem:[#allocation5 + %s2531_s29]] }
  0x2b   : > { %s117_s0 = sld [smem:[#allocation4 + %s2531_s29]]  ;;  %p139_p1 = scmp.ne.s32.totalorder %s2507_s23, %s2503_s22 }
  0x2c   : > { %s3270_s18 = smov (%p51_p0, %s3268_s18), 0  ;;  %p358_p3 = scmp.eq.s32.totalorder %s1968_s15, 3 }
  0x2d   : > { %3234 = sst [smem:[#allocation13_spill]] %s3270_s18  ;;  %p2702_p2 = por %p139_p1, %p102_p12 }
  0x2e   : > { %s91_s10 = ssub.s32 %s2531_s29, %s3270_s18  ;;  %s123_s8 = sld [smem:[#allocation4 + %s3270_s18]] }
  0x2f   : > { %p92_p4 = scmp.eq.s32.totalorder %s91_s10, 0  ;;  %s124_s13 = sld [smem:[#allocation5 + %s3270_s18]] }
  0x30   : > { %s1972_s12 = sadd.s32 4294967295, %s118_s21  ;;  %p2713_p5 = por %p358_p3, %p101_p11 }
  0x31   : > { %s2718_s9 = scalar_select %p92_p4, %s2515_s25, %s94_s19  }
  0x32   : > { %p120_p6 = scmp.lt.s32.totalorder %s2527_s28, %s1972_s12  ;;  %p363_p7 = scmp.ne.s32.totalorder %s2511_s24, %s2499_s1 }
  0x33   : > { %p364_p8 = scmp.eq.s32.totalorder %s1969_s16, 3  ;;  %s132_s2 = sadd.s32 1, %s2507_s23 }
  0x34   : > { %s121_s5 = scalar_select %p120_p6, %s2527_s28, %s1972_s12 }
  0x35   : > { %s1973_s15 = sadd.s32 4294967295, %s124_s13  ;;  %p2724_p9 = por %p364_p8, %p363_p7 }
  0x36   : > { %p126_p10 = scmp.lt.s32.totalorder %s3266_s17, %s1973_s15  ;;  %s122_s10 = sadd.s32 %s121_s5, %s117_s0 }
  0x37   : > { %p1975_p12 = scmp.ge.s32.totalorder %s2535_s30, 4 }
  0x38   : > { %s127_s21 = scalar_select %p126_p10, %s3266_s17, %s1973_s15 }
  0x39   : > { %407 = sbr.rel (%p1975_p12) target bundleno = 93 (0x5d), region = 52 }
  0x3a   : > { %s128_s18 = sadd.s32 %s127_s21, %s123_s8 }
  0x3b   : > { %s129_s6 = ssub.s32 %s122_s10, %s128_s18 }
  0x3c   : > { %p130_p11 = scmp.eq.s32.totalorder %s129_s6, 0 }
  0x3e   : > { %s2732_s26 = scalar_select %p130_p11, %s2507_s23, %s132_s2  }
  0x40   : > { %431 = sbr.rel (!%p2692_p13) target bundleno = 76 (0x4c), region = 60  ;;  %s433_s12 = sand.u32 (%p2692_p13), 1, %s2515_s25  }
  0x41   : > { %s1977_s13 = sshll.u32 (%p2692_p13), %s2531_s29, 3  ;;  %s1976_s16 = sshll.u32 (%p2692_p13), %s433_s12, 5 }
  0x42   : > { %s3238_s3 = sld [smem:[#allocation15_spill]] (%p2692_p13)  ;;  %s435_s2 = scalar_lea.vmem (%p2692_p13), [#allocation6], %s1976_s16 }
  0x48   : > { %s437_s8 = scalar_lea.vmem %s3238_s3, %s1977_s13 }
  0x49   : > { %v471_v0 = vld [vmem:[%s437_s8] sm:$0xff]  ;;  %v473_v1 = vld [vmem:[%s437_s8 + $0x10] sm:$0xff] }
  0x4a   : > { %v475_v2 = vld [vmem:[%s437_s8 + $0x20] sm:$0xff]  ;;  %472 = vst [vmem:[%s435_s2] sm:$0xff] %v471_v0  ;;  %474 = vst [vmem:[%s435_s2 + $0x8] sm:$0xff] %v473_v1  ;;  %v477_v3 = vld [vmem:[%s437_s8 + $0x30] sm:$0xff] }
  0x4b   : > { %476 = vst [vmem:[%s435_s2 + $0x10] sm:$0xff] %v475_v2  ;;  %478 = vst [vmem:[%s435_s2 + $0x18] sm:$0xff] %v477_v3 }
  0x4c PF: > { %484 = sbr.rel (!%p2702_p2) target bundleno = 93 (0x5d), region = 98  ;;  %s490_s6 = sld [smem:[#allocation5 + %s2531_s29]] (%p2702_p2) }
  0x4d   : > { %s489_s18 = sld [smem:[#allocation4 + %s2531_s29]] (%p2702_p2)  ;;  %s486_s20 = sand.u32 (%p2702_p2), 1, %s2507_s23  }
  0x4e   : > { %s1978_s15 = sshll.u32 (%p2702_p2), %s486_s20, 5  ;;  %s3239_s4 = sld [smem:[#allocation16_spill]] (%p2702_p2) }
  0x4f   : > { %s488_s14 = scalar_lea.vmem (%p2702_p2), [#allocation7], %s1978_s15 }
  0x52   : > { %s1979_s0 = sadd.s32 (%p2702_p2), 4294967295, %s490_s6 }
  0x53   : > { %p492_p13 = scmp.lt.s32.totalorder %s2527_s28, %s1979_s0 }
  0x55   : > { %s493_s10 = scalar_select %p492_p13, %s2527_s28, %s1979_s0 }
  0x57   : > { %s494_s21 = sadd.s32 %s493_s10, %s489_s18 }
  0x58   : > { %s2118_s12 = sshll.u32 %s494_s21, 3 }
  0x59   : > { %s497_s19 = scalar_lea.vmem %s3239_s4, %s2118_s12 }
  0x5a   : > { %v531_v4 = vld [vmem:[%s497_s19] sm:$0xff]  ;;  %v533_v5 = vld [vmem:[%s497_s19 + $0x18] sm:$0xff]  ;;  %v535_v6 = vld [vmem:[%s497_s19 + $0x30] sm:$0xff] }
  0x5b   : > { %532 = vst [vmem:[%s488_s14] sm:$0xff] %v531_v4  ;;  %534 = vst [vmem:[%s488_s14 + $0x8] sm:$0xff] %v533_v5  ;;  %v537_v7 = vld [vmem:[%s497_s19 + $0x48] sm:$0xff] }
  0x5c   : > { %536 = vst [vmem:[%s488_s14 + $0x10] sm:$0xff] %v535_v6  ;;  %538 = vst [vmem:[%s488_s14 + $0x18] sm:$0xff] %v537_v7 }
  0x5d PF: > { %p1982_p0 = scmp.ge.s32.totalorder %s2535_s30, 1  ;;  %p543_p1 = scmp.lt.s32.totalorder %s2535_s30, 5 }
  0x5f   : > { %p544_p2 = pnand %p1982_p0, %p543_p1 }
  0x60   : > { %s3240_s5 = sld [smem:[#allocation12_spill]] (!%p544_p2)  ;;  %s3215_s8 = sand.u32 (!%p544_p2), 1, %s2511_s24  }
  0x61   : > { %547 = sbr.rel (%p544_p2) target bundleno = 1600 (0x640), region = 136  ;;  %s557_s2 = sand.u32 (!%p544_p2), 1, %s2503_s22  }
  0x62   : > { %s1983_s6 = sshll.u32 (!%p544_p2), %s3215_s8, 5  ;;  %s1984_s18 = sshll.u32 (!%p544_p2), %s557_s2, 5 }
  0x63   : > { %s614_s20 = sld [smem:[#allocation5 + %s2523_s27]] (!%p544_p2)  ;;  %s2767_s4 = scalar_lea.vmem (!%p544_p2), [#allocation6], %s1983_s6 }
  0x64   : > { %s613_s0 = sld [smem:[#allocation4 + %s2523_s27]] (!%p544_p2)  ;;  %s2769_s22 = scalar_lea.vmem (!%p544_p2), [#allocation7], %s1984_s18 }
  0x65   : > { %s3241_s14 = sld [smem:[#allocation14_spill]] (!%p544_p2)  ;;  %s2771_s2 = scalar_lea.vmem (!%p544_p2), [#allocation8], %s1983_s6 }
  0x66   : > { %p1989_p6 = scmp.ne.s32.totalorder (!%p544_p2), %s3240_s5, 0 }
  0x68   : > { %v2539_v8 = vmov (!%p1989_p6), 0.0  }
  0x69   : > { %s1986_s15 = sadd.s32 4294967295, %s614_s20  ;;  %643 = vst [vmem:[#allocation2] sm:$0xff] (!%p1989_p6), %v2539_v8  ;;  %644 = vst [vmem:[#allocation2 + $0x8] sm:$0xff] (!%p1989_p6), %v2539_v8 }
  0x6a   : > { %p616_p3 = scmp.lt.s32.totalorder %s3240_s5, %s1986_s15  ;;  %645 = vst [vmem:[#allocation2 + $0x10] sm:$0xff] (!%p1989_p6), %v2539_v8  ;;  %646 = vst [vmem:[#allocation2 + $0x18] sm:$0xff] (!%p1989_p6), %v2539_v8 }
  0x6c   : > { %s617_s10 = scalar_select %p616_p3, %s3240_s5, %s1986_s15 }
  0x6e   : > { %s618_s21 = sadd.s32 %s617_s10, %s613_s0  ;;  %642 = sbr.rel (%p1989_p6) target bundleno = 117 (0x75), region = 148 }
  0x6f   : > { %s1987_s12 = sshll.u32 %s618_s21, 5 }
  0x70   : > { %p620_p4 = scmp.lt.s32.totalorder %s1987_s12, 95 }
  0x72   : > { %s3272_s12 = smov (!%p620_p4, %s1987_s12), 95 }
  0x73   : > { %s1988_s13 = sshll.u32 %s3272_s12, 3 }
  0x74   : > { %s2765_s3 = scalar_lea.vmem %s3241_s14, %s1988_s13 }
  0x75 PF: > { %s647_s20 = sld [smem:[#allocation5 + %s2523_s27]] }
  0x76   : > { %s3242_s0 = sld [smem:[#allocation12_spill]] }
  0x7c   : > { %p1990_p7 = scmp.ge.s32.totalorder %s3242_s0, %s647_s20 }
  0x7d   : > { %s1991_s6 = sshll.u32 (!%p1990_p7), %s2523_s27, 7  ;;  %v669_v9 = vld [vmem:[%s2765_s3 + $0x80] sm:$0xff] (!%p1990_p7)  ;;  %v2540_v11 = vmov (!%p1990_p7), 0   ;;  %v670_v13 = vld [vmem:[%s2765_s3 + $0x88] sm:$0xff] (!%p1990_p7)  ;;  %v671_v19 = vld [vmem:[%s2765_s3 + $0x90] sm:$0xff] (!%p1990_p7) }
  0x7e   : > { %651 = sbr.rel (%p1990_p7) target bundleno = 542 (0x21e), region = 152  ;;  %v653_v10 = vld [vmem:[%s2765_s3] sm:$0xff] (!%p1990_p7)  ;;  %2370 = vset.pattern.permute.xlu1 (!%p1990_p7), %v2540_v11  ;;  %2369 = vset.pattern.permute.xlu0 (!%p1990_p7), %v2540_v11  ;;  %v2779_v12 = vstv (!%p1990_p7), %s1991_s6  ;;  %v654_v14 = vld [vmem:[%s2765_s3 + $0x8] sm:$0xff] (!%p1990_p7)  ;;  %v672_v20 = vld [vmem:[%s2765_s3 + $0x98] sm:$0xff] (!%p1990_p7) }
  0x7f   : > { %v702_v15 = vsub.s32 (!%p1990_p7), %v669_v9, %v2779_v12  ;;  %v686_v16 = vsub.s32 (!%p1990_p7), %v653_v10, %v2779_v12  ;;  %v703_v17 = vsub.s32 (!%p1990_p7), %v670_v13, %v2779_v12  ;;  %v687_v18 = vsub.s32 (!%p1990_p7), %v654_v14, %v2779_v12  ;;  %v655_v23 = vld [vmem:[%s2765_s3 + $0x10] sm:$0xff] (!%p1990_p7)  ;;  %v656_v24 = vld [vmem:[%s2765_s3 + $0x18] sm:$0xff] (!%p1990_p7)  ;;  %v673_v27 = vld [vmem:[%s2765_s3 + $0xa0] sm:$0xff] (!%p1990_p7) }
  0x80   : > { %v704_v21 = vsub.s32 (!%p1990_p7), %v671_v19, %v2779_v12  ;;  %v705_v22 = vsub.s32 (!%p1990_p7), %v672_v20, %v2779_v12  ;;  %v688_v25 = vsub.s32 (!%p1990_p7), %v655_v23, %v2779_v12  ;;  %v689_v26 = vsub.s32 (!%p1990_p7), %v656_v24, %v2779_v12  ;;  %v674_v28 = vld [vmem:[%s2765_s3 + $0xa8] sm:$0xff] (!%p1990_p7)  ;;  %v657_v31 = vld [vmem:[%s2765_s3 + $0x20] sm:$0xff] (!%p1990_p7)  ;;  %v675_v35 = vld [vmem:[%s2765_s3 + $0xb0] sm:$0xff] (!%p1990_p7) }
  0x81   : > { %769 = vperm.xlu0 (!%p1990_p7), %2369, %v702_v15   ;;  %721 = vperm.xlu1 (!%p1990_p7), %2370, %v686_v16   ;;  %v706_v29 = vsub.s32 (!%p1990_p7), %v673_v27, %v2779_v12  ;;  %v707_v30 = vsub.s32 (!%p1990_p7), %v674_v28, %v2779_v12  ;;  %v658_v32 = vld [vmem:[%s2765_s3 + $0x28] sm:$0xff] (!%p1990_p7)  ;;  %v690_v33 = vsub.s32 (!%p1990_p7), %v657_v31, %v2779_v12  ;;  %v676_v36 = vld [vmem:[%s2765_s3 + $0xb8] sm:$0xff] (!%p1990_p7)  ;;  %v659_v39 = vld [vmem:[%s2765_s3 + $0x30] sm:$0xff] (!%p1990_p7)  ;;  %v718_v14 = vlaneseq (!%p1990_p7) }
  0x82   : > { %v691_v34 = vsub.s32 (!%p1990_p7), %v658_v32, %v2779_v12  ;;  %v708_v37 = vsub.s32 (!%p1990_p7), %v675_v35, %v2779_v12  ;;  %v709_v38 = vsub.s32 (!%p1990_p7), %v676_v36, %v2779_v12  ;;  %v660_v40 = vld [vmem:[%s2765_s3 + $0x38] sm:$0xff] (!%p1990_p7)  ;;  %v692_v41 = vsub.s32 (!%p1990_p7), %v659_v39, %v2779_v12  ;;  %v677_v43 = vld [vmem:[%s2765_s3 + $0xc0] sm:$0xff] (!%p1990_p7)  ;;  %v678_v44 = vld [vmem:[%s2765_s3 + $0xc8] sm:$0xff] (!%p1990_p7) }
  0x83   : > { %v693_v42 = vsub.s32 (!%p1990_p7), %v660_v40, %v2779_v12  ;;  %v710_v45 = vsub.s32 (!%p1990_p7), %v677_v43, %v2779_v12  ;;  %v711_v46 = vsub.s32 (!%p1990_p7), %v678_v44, %v2779_v12  ;;  %v661_v47 = vld [vmem:[%s2765_s3 + $0x40] sm:$0xff] (!%p1990_p7)  ;;  %v662_v48 = vld [vmem:[%s2765_s3 + $0x48] sm:$0xff] (!%p1990_p7)  ;;  %v679_v51 = vld [vmem:[%s2765_s3 + $0xd0] sm:$0xff] (!%p1990_p7) }
  0x84   : > { %v694_v49 = vsub.s32 (!%p1990_p7), %v661_v47, %v2779_v12  ;;  %v695_v50 = vsub.s32 (!%p1990_p7), %v662_v48, %v2779_v12  ;;  %v680_v52 = vld [vmem:[%s2765_s3 + $0xd8] sm:$0xff] (!%p1990_p7)  ;;  %v712_v53 = vsub.s32 (!%p1990_p7), %v679_v51, %v2779_v12  ;;  %v663_v55 = vld [vmem:[%s2765_s3 + $0x50] sm:$0xff] (!%p1990_p7)  ;;  %v681_v59 = vld [vmem:[%s2765_s3 + $0xe0] sm:$0xff] (!%p1990_p7) }
  0x85   : > { %772 = vperm.xlu0 %2369, %v703_v17   ;;  %724 = vperm.xlu1 %2370, %v687_v18   ;;  %v713_v54 = vsub.s32 %v680_v52, %v2779_v12  ;;  %v664_v56 = vld [vmem:[%s2765_s3 + $0x58] sm:$0xff]  ;;  %v696_v57 = vsub.s32 %v663_v55, %v2779_v12  ;;  %v682_v60 = vld [vmem:[%s2765_s3 + $0xe8] sm:$0xff]  ;;  %v714_v61 = vsub.s32 %v681_v59, %v2779_v12  ;;  %v665_v63 = vld [vmem:[%s2765_s3 + $0x60] sm:$0xff]  ;;  %v2845_v17 = vand.u32 127, %v718_v14 }
  0x86   : > { %v697_v58 = vsub.s32 %v664_v56, %v2779_v12  ;;  %v715_v62 = vsub.s32 %v682_v60, %v2779_v12  ;;  %v666_v0 = vld [vmem:[%s2765_s3 + $0x68] sm:$0xff]  ;;  %v698_v1 = vsub.s32 %v665_v63, %v2779_v12  ;;  %v683_v3 = vld [vmem:[%s2765_s3 + $0xf0] sm:$0xff]  ;;  %v684_v4 = vld [vmem:[%s2765_s3 + $0xf8] sm:$0xff] }
  0x87   : > { %v699_v2 = vsub.s32 %v666_v0, %v2779_v12  ;;  %v716_v5 = vsub.s32 %v683_v3, %v2779_v12  ;;  %v717_v6 = vsub.s32 %v684_v4, %v2779_v12  ;;  %v667_v7 = vld [vmem:[%s2765_s3 + $0x70] sm:$0xff]  ;;  %v668_v8 = vld [vmem:[%s2765_s3 + $0x78] sm:$0xff]  ;;  %v2373_v11 = vld [vmem:[%s2769_s22 + $0x4] ss:$8 sps:$4 sm:$0xff]  }
  0x88   : > { %v700_v9 = vsub.s32 %v667_v7, %v2779_v12  ;;  %v701_v10 = vsub.s32 %v668_v8, %v2779_v12  ;;  %v2376_v13 = vld [vmem:[%s2769_s22 + $0x14] ss:$8 sps:$4 sm:$0xff]   ;;  %988 = vmatprep.mubr.bf16.mxu0 %v2373_v11  ;;  %v2541_v12 = vmov 1.0|1.0   ;;  %v2371_v48 = vld [vmem:[%s2769_s22] ss:$8 sps:$4 sm:$0xff]  }
  0x89   : > { %775 = vperm.xlu0 %2369, %v704_v21   ;;  %778 = vperm.xlu1 %2370, %v705_v22   ;;  %v928_v52 = vld [vmem:[#allocation2] sm:$0xff]  ;;  %v929_v60 = vld [vmem:[#allocation2 + $0x8] sm:$0xff] }
  0x8a   : > { %996 = vmatprep.mubr.bf16.mxu1 %v2376_v13 }
  0x8d   : > { %727 = vperm.xlu0 %2369, %v688_v25   ;;  %730 = vperm.xlu1 %2370, %v689_v26  }
  0x91   : > { %781 = vperm.xlu0 %2369, %v706_v29   ;;  %784 = vperm.xlu1 %2370, %v707_v30  }
  0x95   : > { %733 = vperm.xlu0 %2369, %v690_v33   ;;  %736 = vperm.xlu1 %2370, %v691_v34  }
  0x99   : > { %787 = vperm.xlu0 %2369, %v708_v37   ;;  %790 = vperm.xlu1 %2370, %v709_v38  }
  0x9d   : > { %739 = vperm.xlu0 %2369, %v692_v41   ;;  %742 = vperm.xlu1 %2370, %v693_v42  }
  0xa1   : > { %793 = vperm.xlu0 %2369, %v710_v45   ;;  %796 = vperm.xlu1 %2370, %v711_v46  }
  0xa5   : > { %745 = vperm.xlu0 %2369, %v694_v49   ;;  %748 = vperm.xlu1 %2370, %v695_v50   ;;  %v2374_v49 = vld [vmem:[%s2769_s22 + $0x10] ss:$8 sps:$4 sm:$0xff]  }
  0xa9   : > { %799 = vperm.xlu0 %2369, %v712_v53   ;;  %802 = vperm.xlu1 %2370, %v713_v54   ;;  %v930_v54 = vld [vmem:[#allocation2 + $0x10] sm:$0xff] }
  0xad   : > { %751 = vperm.xlu0 %2369, %v696_v57   ;;  %754 = vperm.xlu1 %2370, %v697_v58  }
  0xb1   : > { %805 = vperm.xlu0 %2369, %v714_v61   ;;  %808 = vperm.xlu1 %2370, %v715_v62   ;;  %v931_v62 = vld [vmem:[#allocation2 + $0x18] sm:$0xff] }
  0xb5   : > { %757 = vperm.xlu0 %2369, %v698_v1   ;;  %760 = vperm.xlu1 %2370, %v699_v2  }
  0xb9   : > { %811 = vperm.xlu0 %2369, %v716_v5   ;;  %814 = vperm.xlu1 %2370, %v717_v6  }
  0xbd   : > { %763 = vperm.xlu0 %2369, %v700_v9   ;;  %766 = vperm.xlu1 %2370, %v701_v10  }
 0x100   : > { %v770_v15 = vpop.permute.xlu0 %769  ;;  %v722_v16 = vpop.permute.xlu1 %721 }
 0x101   : > { %vm816_vm0 = vcmp.eq.s32.totalorder %v722_v16, %v2845_v17  ;;  %vm832_vm3 = vcmp.eq.s32.totalorder %v770_v15, %v2845_v17 }
 0x104   : > { %v773_v18 = vpop.permute.xlu0 %772  ;;  %v725_v19 = vpop.permute.xlu1 %724 }
 0x105   : > { %vm833_vm1 = vcmp.eq.s32.totalorder %v773_v18, %v2845_v17  ;;  %vm817_vm2 = vcmp.eq.s32.totalorder %v725_v19, %v2845_v17 }
 0x106   : > { %vm2028_vm4 = vmpackc.low %vm817_vm2, %vm816_vm0 }
 0x107   : > { %vm2044_vm5 = vmpackc.low %vm833_vm1, %vm832_vm3 }
 0x108   : > { %2119 = vmatprep.subr.msk.bf16.mxu0 %vm2044_vm5, %v2541_v12  ;;  %2249 = vmatprep.subr.msk.bf16.mxu1 %vm2044_vm5, %v2541_v12  ;;  %v776_v20 = vpop.permute.xlu0 %775  ;;  %v779_v21 = vpop.permute.xlu1 %778 }
 0x109   : > { %vm834_vm6 = vcmp.eq.s32.totalorder %v776_v20, %v2845_v17  ;;  %2120 = vmatpush3.bf16.msk.msra.mxu0 %vm2028_vm4, %v2541_v12  ;;  %2257 = vmatpush3.bf16.msk.msra.mxu1 %vm2028_vm4, %v2541_v12  ;;  %vm835_vm7 = vcmp.eq.s32.totalorder %v779_v21, %v2845_v17 }
 0x10a   : > { %vm2046_vm8 = vmpackc.low %vm835_vm7, %vm834_vm6 }
 0x10b   : > { %2121 = vmatprep.subr.msk.bf16.mxu0 %vm2046_vm8, %v2541_v12  ;;  %2250 = vmatprep.subr.msk.bf16.mxu1 %vm2046_vm8, %v2541_v12 }
 0x10c   : > { %v728_v22 = vpop.permute.xlu0 %727  ;;  %v731_v23 = vpop.permute.xlu1 %730 }
 0x10d   : > { %vm818_vm9 = vcmp.eq.s32.totalorder %v728_v22, %v2845_v17  ;;  %vm819_vm10 = vcmp.eq.s32.totalorder %v731_v23, %v2845_v17 }
 0x10e   : > { %vm2030_vm11 = vmpackc.low %vm819_vm10, %vm818_vm9 }
 0x10f   : > { %2122 = vmatpush3.bf16.msk.msra.mxu0 %vm2030_vm11, %v2541_v12  ;;  %2258 = vmatpush3.bf16.msk.msra.mxu1 %vm2030_vm11, %v2541_v12 }
 0x110   : > { %v782_v24 = vpop.permute.xlu0 %781  ;;  %v785_v25 = vpop.permute.xlu1 %784 }
 0x111   : > { %vm836_vm12 = vcmp.eq.s32.totalorder %v782_v24, %v2845_v17  ;;  %vm837_vm13 = vcmp.eq.s32.totalorder %v785_v25, %v2845_v17 }
 0x112   : > { %vm2048_vm14 = vmpackc.low %vm837_vm13, %vm836_vm12 }
 0x113   : > { %2123 = vmatprep.subr.msk.bf16.mxu0 %vm2048_vm14, %v2541_v12  ;;  %2251 = vmatprep.subr.msk.bf16.mxu1 %vm2048_vm14, %v2541_v12 }
 0x114   : > { %v734_v26 = vpop.permute.xlu0 %733  ;;  %v737_v27 = vpop.permute.xlu1 %736 }
 0x115   : > { %vm820_vm15 = vcmp.eq.s32.totalorder %v734_v26, %v2845_v17  ;;  %vm821_vm0 = vcmp.eq.s32.totalorder %v737_v27, %v2845_v17 }
 0x116   : > { %vm2032_vm1 = vmpackc.low %vm821_vm0, %vm820_vm15 }
 0x117   : > { %2124 = vmatpush3.bf16.msk.msra.mxu0 %vm2032_vm1, %v2541_v12  ;;  %2259 = vmatpush3.bf16.msk.msra.mxu1 %vm2032_vm1, %v2541_v12 }
 0x118   : > { %v788_v28 = vpop.permute.xlu0 %787  ;;  %v791_v29 = vpop.permute.xlu1 %790 }
 0x119   : > { %vm838_vm2 = vcmp.eq.s32.totalorder %v788_v28, %v2845_v17  ;;  %vm839_vm3 = vcmp.eq.s32.totalorder %v791_v29, %v2845_v17 }
 0x11a   : > { %vm2050_vm4 = vmpackc.low %vm839_vm3, %vm838_vm2 }
 0x11b   : > { %2125 = vmatprep.subr.msk.bf16.mxu0 %vm2050_vm4, %v2541_v12  ;;  %2252 = vmatprep.subr.msk.bf16.mxu1 %vm2050_vm4, %v2541_v12 }
 0x11c   : > { %v740_v30 = vpop.permute.xlu0 %739  ;;  %v743_v31 = vpop.permute.xlu1 %742 }
 0x11d   : > { %vm822_vm5 = vcmp.eq.s32.totalorder %v740_v30, %v2845_v17  ;;  %vm823_vm6 = vcmp.eq.s32.totalorder %v743_v31, %v2845_v17 }
 0x11e   : > { %vm2034_vm7 = vmpackc.low %vm823_vm6, %vm822_vm5 }
 0x11f   : > { %2126 = vmatpush3.bf16.msk.msra.mxu0 %vm2034_vm7, %v2541_v12  ;;  %2260 = vmatpush3.bf16.msk.msra.mxu1 %vm2034_vm7, %v2541_v12 }
 0x120   : > { %v794_v32 = vpop.permute.xlu0 %793  ;;  %v797_v33 = vpop.permute.xlu1 %796 }
 0x121   : > { %vm840_vm8 = vcmp.eq.s32.totalorder %v794_v32, %v2845_v17  ;;  %vm841_vm9 = vcmp.eq.s32.totalorder %v797_v33, %v2845_v17 }
 0x122   : > { %vm2052_vm10 = vmpackc.low %vm841_vm9, %vm840_vm8 }
 0x123   : > { %2127 = vmatprep.subr.msk.bf16.mxu0 %vm2052_vm10, %v2541_v12  ;;  %2253 = vmatprep.subr.msk.bf16.mxu1 %vm2052_vm10, %v2541_v12 }
 0x124   : > { %v746_v34 = vpop.permute.xlu0 %745  ;;  %v749_v35 = vpop.permute.xlu1 %748 }
 0x125   : > { %vm824_vm11 = vcmp.eq.s32.totalorder %v746_v34, %v2845_v17  ;;  %vm825_vm12 = vcmp.eq.s32.totalorder %v749_v35, %v2845_v17 }
 0x126   : > { %vm2036_vm13 = vmpackc.low %vm825_vm12, %vm824_vm11 }
 0x127   : > { %2128 = vmatpush3.bf16.msk.msra.mxu0 %vm2036_vm13, %v2541_v12  ;;  %2261 = vmatpush3.bf16.msk.msra.mxu1 %vm2036_vm13, %v2541_v12 }
 0x128   : > { %v800_v36 = vpop.permute.xlu0 %799  ;;  %v803_v37 = vpop.permute.xlu1 %802 }
 0x129   : > { %vm842_vm14 = vcmp.eq.s32.totalorder %v800_v36, %v2845_v17  ;;  %vm843_vm15 = vcmp.eq.s32.totalorder %v803_v37, %v2845_v17 }
 0x12a   : > { %vm2054_vm0 = vmpackc.low %vm843_vm15, %vm842_vm14 }
 0x12b   : > { %2129 = vmatprep.subr.msk.bf16.mxu0 %vm2054_vm0, %v2541_v12  ;;  %2254 = vmatprep.subr.msk.bf16.mxu1 %vm2054_vm0, %v2541_v12 }
 0x12c   : > { %v752_v38 = vpop.permute.xlu0 %751  ;;  %v755_v39 = vpop.permute.xlu1 %754 }
 0x12d   : > { %vm826_vm1 = vcmp.eq.s32.totalorder %v752_v38, %v2845_v17  ;;  %vm827_vm2 = vcmp.eq.s32.totalorder %v755_v39, %v2845_v17 }
 0x12e   : > { %vm2038_vm3 = vmpackc.low %vm827_vm2, %vm826_vm1 }
 0x12f   : > { %2130 = vmatpush3.bf16.msk.msra.mxu0 %vm2038_vm3, %v2541_v12  ;;  %2262 = vmatpush3.bf16.msk.msra.mxu1 %vm2038_vm3, %v2541_v12 }
 0x130   : > { %v806_v40 = vpop.permute.xlu0 %805  ;;  %v809_v41 = vpop.permute.xlu1 %808 }
 0x131   : > { %vm844_vm4 = vcmp.eq.s32.totalorder %v806_v40, %v2845_v17  ;;  %vm845_vm5 = vcmp.eq.s32.totalorder %v809_v41, %v2845_v17 }
 0x132   : > { %vm2056_vm6 = vmpackc.low %vm845_vm5, %vm844_vm4 }
 0x133   : > { %2131 = vmatprep.subr.msk.bf16.mxu0 %vm2056_vm6, %v2541_v12  ;;  %2255 = vmatprep.subr.msk.bf16.mxu1 %vm2056_vm6, %v2541_v12 }
 0x134   : > { %v758_v42 = vpop.permute.xlu0 %757  ;;  %v761_v43 = vpop.permute.xlu1 %760 }
 0x135   : > { %vm828_vm7 = vcmp.eq.s32.totalorder %v758_v42, %v2845_v17  ;;  %vm829_vm8 = vcmp.eq.s32.totalorder %v761_v43, %v2845_v17 }
 0x136   : > { %vm2040_vm9 = vmpackc.low %vm829_vm8, %vm828_vm7 }
 0x137   : > { %2132 = vmatpush3.bf16.msk.msra.mxu0 %vm2040_vm9, %v2541_v12  ;;  %2263 = vmatpush3.bf16.msk.msra.mxu1 %vm2040_vm9, %v2541_v12 }
 0x138   : > { %v812_v44 = vpop.permute.xlu0 %811  ;;  %v815_v45 = vpop.permute.xlu1 %814 }
 0x139   : > { %vm846_vm10 = vcmp.eq.s32.totalorder %v812_v44, %v2845_v17  ;;  %vm847_vm11 = vcmp.eq.s32.totalorder %v815_v45, %v2845_v17 }
 0x13a   : > { %vm2058_vm12 = vmpackc.low %vm847_vm11, %vm846_vm10 }
 0x13b   : > { %2133 = vmatprep.subr.msk.bf16.mxu0 %vm2058_vm12, %v2541_v12  ;;  %2256 = vmatprep.subr.msk.bf16.mxu1 %vm2058_vm12, %v2541_v12 }
 0x13c   : > { %v764_v46 = vpop.permute.xlu0 %763  ;;  %v767_v47 = vpop.permute.xlu1 %766 }
 0x13d   : > { %vm830_vm13 = vcmp.eq.s32.totalorder %v764_v46, %v2845_v17  ;;  %vm831_vm14 = vcmp.eq.s32.totalorder %v767_v47, %v2845_v17 }
 0x13e   : > { %vm2042_vm15 = vmpackc.low %vm831_vm14, %vm830_vm13 }
 0x13f   : > { %2134 = vmatpush3.bf16.msk.msra.mxu0 %vm2042_vm15, %v2541_v12  ;;  %2264 = vmatpush3.bf16.msk.msra.mxu1 %vm2042_vm15, %v2541_v12 }
 0x142   : > { %989 = vmatmul.mubr.bf16.vlgmr.msra.gmra.mrb[0].mxu0 %v2371_v48  ;;  %997 = vmatmul.mubr.bf16.vlgmr.msra.gmra.mrb[0].mxu1 %v2374_v49 }
 0x215   : > { %v2135_v50 = vpop.f32.mrb[0].mxu0  ;;  %v2141_v51 = vpop.f32.mrb[0].mxu1 }
 0x216   : > { %v2136_v53 = vpop.f32.mrb[1].mxu0  ;;  %v2142_v55 = vpop.f32.mrb[1].mxu1 }
 0x217   : > { %v2137_v56 = vadd.f32 %v2136_v53, %v2135_v50  ;;  %v2143_v57 = vadd.f32 %v2142_v55, %v2141_v51  ;;  %v2138_v58 = vpop.f32.mrb[2].mxu0  ;;  %v2144_v59 = vpop.f32.mrb[2].mxu1 }
 0x218   : > { %v2139_v61 = vpop.f32.mrb[3].mxu0  ;;  %v2145_v63 = vpop.f32.mrb[3].mxu1 }
 0x219   : > { %v1005_v0 = vadd.f32 %v2137_v56, %v928_v52  ;;  %v1007_v1 = vadd.f32 %v2143_v57, %v930_v54  ;;  %v2140_v2 = vadd.f32 %v2139_v61, %v2138_v58  ;;  %v2146_v3 = vadd.f32 %v2145_v63, %v2144_v59 }
 0x21b   : > { %1009 = vst [vmem:[#allocation2] sm:$0xff] %v1005_v0  ;;  %1011 = vst [vmem:[#allocation2 + $0x10] sm:$0xff] %v1007_v1  ;;  %v1006_v4 = vadd.f32 %v2140_v2, %v929_v60  ;;  %v1008_v5 = vadd.f32 %v2146_v3, %v931_v62 }
 0x21d   : > { %1010 = vst [vmem:[#allocation2 + $0x8] sm:$0xff] %v1006_v4  ;;  %1012 = vst [vmem:[#allocation2 + $0x18] sm:$0xff] %v1008_v5 }
 0x21e PF: > { %s3243_s3 = sld [smem:[#allocation12_spill]] }
 0x224   : > { %p2060_p8 = scmp.ne.s32.totalorder %s3243_s3, 1 }
 0x225   : > { %v1039_v6 = vld [vmem:[#allocation2] sm:$0xff] (!%p2060_p8)  ;;  %v1040_v7 = vld [vmem:[#allocation2 + $0x8] sm:$0xff] (!%p2060_p8)  ;;  %v1041_v8 = vld [vmem:[#allocation2 + $0x10] sm:$0xff] (!%p2060_p8)  ;;  %vm1065_vm0 = vcmask (!%p2060_p8), 261120   ;;  %v2542_v11 = vmov (!%p2060_p8), 0   ;;  %s3244_s15 = sld [smem:[#allocation18_spill]] (!%p2060_p8) }
 0x226   : > { %1016 = sbr.rel (%p2060_p8) target bundleno = 1572 (0x624), region = 156  ;;  %v1043_v9 = vpack.c.bf16 (!%p2060_p8), %v1040_v7, %v1039_v6  ;;  %v1042_v10 = vld [vmem:[#allocation2 + $0x18] sm:$0xff] (!%p2060_p8)  ;;  %2377 = vset.pattern.permute.xlu0 (!%p2060_p8), %v2542_v11  ;;  %2378 = vset.pattern.permute.xlu1 (!%p2060_p8), %v2542_v11  ;;  %v2918_v15 = vld [vmem:[%s2767_s4] sm:$0xff] (!%p2060_p8)  ;;  %v2921_v16 = vld [vmem:[%s2767_s4 + $0x8] sm:$0xff] (!%p2060_p8)  ;;  %s3245_s14 = sld [smem:[#allocation19_spill]] (!%p2060_p8)  ;;  %vm1384_vm1 = vcmask (!%p2060_p8), 523264  }
 0x227   : > { %v1044_v13 = vpack.c.bf16 (!%p2060_p8), %v1042_v10, %v1041_v8  ;;  %v1029_v17 = vpack.c.bf16 (!%p2060_p8), %v2921_v16, %v2918_v15  ;;  %v2927_v18 = vld [vmem:[%s2767_s4 + $0x10] sm:$0xff] (!%p2060_p8)  ;;  %v2930_v19 = vld [vmem:[%s2767_s4 + $0x18] sm:$0xff] (!%p2060_p8)  ;;  %s3246_s12 = sld [smem:[#allocation17_spill]] (!%p2060_p8)  ;;  %s3247_s16 = sld [smem:[#allocation21_spill]] (!%p2060_p8) }
 0x228   : > { %2181 = vmatprep.subr.bf16.mxu0 (!%p2060_p8), %v1043_v9  ;;  %v1030_v21 = vpack.c.bf16 (!%p2060_p8), %v2930_v19, %v2927_v18  ;;  %s3248_s21 = sld [smem:[#allocation23_spill]] (!%p2060_p8)  ;;  %s3249_s5 = sld [smem:[#allocation24_spill]] (!%p2060_p8) }
 0x229   : > { %2182 = vmatpush3.bf16.msra.mxu0 (!%p2060_p8), %v1043_v9  ;;  %s3250_s6 = sld [smem:[#allocation25_spill]] (!%p2060_p8)  ;;  %s3251_s20 = sld [smem:[#allocation20_spill]] (!%p2060_p8) }
 0x22a   : > { %2183 = vmatprep.subr.bf16.mxu0 (!%p2060_p8), %v1044_v13  ;;  %s3252_s4 = sld [smem:[#allocation22_spill]] (!%p2060_p8)  ;;  %s2113_s0 = sshll.u32 (!%p2060_p8), %s2523_s27, 7 }
 0x22b   : > { %v2379_v14 = vld [vmem:[%s3244_s15] sm:$0xff] (!%p2060_p8)   ;;  %v2380_v12 = vld [vmem:[%s3244_s15 + $0x8] sm:$0xff] (!%p2060_p8)   ;;  %v2381_v20 = vld [vmem:[%s3244_s15 + $0x10] sm:$0xff] (!%p2060_p8)  }
 0x22c   : > { %2185 = vmatprep.mubr.msk.bf16.mxu0 (!%p2060_p8), %vm1065_vm0, %v2379_v14  ;;  %v1240_v22 = vld [vmem:[%s3245_s14] sm:$0xff] (!%p2060_p8)  ;;  %v1242_v23 = vld [vmem:[%s3245_s14 + $0x10] sm:$0xff] (!%p2060_p8)  ;;  %v1241_v24 = vld [vmem:[%s3245_s14 + $0x8] sm:$0xff] (!%p2060_p8) }
 0x22d   : > { %2184 = vmatpush3.bf16.msra.mxu0 %v1044_v13  ;;  %1250 = vperm.xlu0 %2377, %v1240_v22   ;;  %v1243_v25 = vld [vmem:[%s3245_s14 + $0x18] sm:$0xff]  ;;  %v2383_v27 = vld [vmem:[%s3246_s12] sm:$0xff]   ;;  %v1245_v29 = vld [vmem:[%s3245_s14 + $0x28] sm:$0xff] }
 0x22e   : > { %2193 = vmatprep.subr.bf16.mxu0 %v1029_v17  ;;  %1260 = vperm.xlu1 %2378, %v1242_v23   ;;  %v2382_v26 = vld [vmem:[%s3244_s15 + $0x18] sm:$0xff]   ;;  %v1244_v28 = vld [vmem:[%s3245_s14 + $0x20] sm:$0xff]  ;;  %v1246_v30 = vld [vmem:[%s3245_s14 + $0x30] sm:$0xff] }
 0x22f   : > { %v2384_v31 = vld [vmem:[%s3246_s12 + $0x8] sm:$0xff]   ;;  %v2385_v32 = vld [vmem:[%s3246_s12 + $0x10] sm:$0xff]   ;;  %v1247_v33 = vld [vmem:[%s3245_s14 + $0x38] sm:$0xff] }
 0x230   : > { %2186 = vmatmul.mubr.msk.bf16.vlgmr.msra.gmra.mrb[0].mxu0 %vm1065_vm0, %v2380_v12  ;;  %v1316_v34 = vld [vmem:[%s3247_s16] sm:$0xff]  ;;  %v1317_v35 = vld [vmem:[%s3247_s16 + $0x8] sm:$0xff]  ;;  %v1318_v36 = vld [vmem:[%s3247_s16 + $0x10] sm:$0xff] }
 0x231   : > { %2194 = vmatpush3.bf16.msra.mxu0 %v1029_v17  ;;  %2189 = vmatprep.mubr.msk.bf16.mxu0 %vm1065_vm0, %v2381_v20  ;;  %v1319_v37 = vld [vmem:[%s3247_s16 + $0x18] sm:$0xff]  ;;  %v1320_v39 = vld [vmem:[%s3247_s16 + $0x20] sm:$0xff]  ;;  %v1321_v40 = vld [vmem:[%s3247_s16 + $0x28] sm:$0xff] }
 0x232   : > { %2195 = vmatprep.subr.bf16.mxu0 %v1030_v21  ;;  %1255 = vperm.xlu0 %2377, %v1241_v24   ;;  %v2386_v38 = vld [vmem:[%s3246_s12 + $0x18] sm:$0xff]   ;;  %v1322_v41 = vld [vmem:[%s3247_s16 + $0x30] sm:$0xff]  ;;  %v2093_v43 = vld [vmem:[%s3247_s16 + $0x40] sm:$0xff] }
 0x233   : > { %1265 = vperm.xlu1 %2378, %v1243_v25   ;;  %v1323_v42 = vld [vmem:[%s3247_s16 + $0x38] sm:$0xff]  ;;  %v2094_v44 = vld [vmem:[%s3247_s16 + $0x48] sm:$0xff]  ;;  %v2095_v45 = vld [vmem:[%s3247_s16 + $0x50] sm:$0xff] }
 0x234   : > { %v2096_v46 = vld [vmem:[%s3247_s16 + $0x58] sm:$0xff]  ;;  %v2097_v47 = vld [vmem:[%s3247_s16 + $0x60] sm:$0xff]  ;;  %v2098_v48 = vld [vmem:[%s3247_s16 + $0x68] sm:$0xff] }
 0x235   : > { %2196 = vmatpush3.bf16.msra.mxu0 %v1030_v21  ;;  %v2099_v49 = vld [vmem:[%s3247_s16 + $0x70] sm:$0xff]  ;;  %v2100_v50 = vld [vmem:[%s3247_s16 + $0x78] sm:$0xff]  ;;  %v1645_v51 = vld [vmem:[%s3248_s21] sm:$0xff] }
 0x236   : > { %1270 = vperm.xlu0 %2377, %v1244_v28   ;;  %v1646_v52 = vld [vmem:[%s3248_s21 + $0x8] sm:$0xff]  ;;  %v1647_v53 = vld [vmem:[%s3248_s21 + $0x10] sm:$0xff]  ;;  %v1648_v54 = vld [vmem:[%s3248_s21 + $0x18] sm:$0xff] }
 0x237   : > { %1275 = vperm.xlu1 %2378, %v1245_v29   ;;  %v1769_v55 = vld [vmem:[%s3249_s5] sm:$0xff]  ;;  %v1770_v56 = vld [vmem:[%s3249_s5 + $0x8] sm:$0xff]  ;;  %v1771_v57 = vld [vmem:[%s3249_s5 + $0x10] sm:$0xff] }
 0x238   : > { %2190 = vmatmul.mubr.msk.bf16.gmra.mrb[4].mxu0 %vm1065_vm0, %v2382_v26  ;;  %v1772_v58 = vld [vmem:[%s3249_s5 + $0x18] sm:$0xff]  ;;  %v1797_v59 = vld [vmem:[%s3250_s6] sm:$0xff]  ;;  %v1798_v60 = vld [vmem:[%s3250_s6 + $0x8] sm:$0xff] }
 0x239   : > { %2197 = vmatprep.mubr.msk.bf16.mxu0 %vm1065_vm0, %v2383_v27  ;;  %v1799_v61 = vld [vmem:[%s3250_s6 + $0x10] sm:$0xff]  ;;  %v1800_v62 = vld [vmem:[%s3250_s6 + $0x18] sm:$0xff]  ;;  %v2387_v63 = vld [vmem:[%s3251_s20] sm:$0xff]  }
 0x23a   : > { %1280 = vperm.xlu0 %2377, %v1246_v30   ;;  %2213 = vmatprep.mubr.msk.bf16.mxu1 %vm1384_vm1, %v2387_v63 }
 0x23b   : > { %1285 = vperm.xlu1 %2378, %v1247_v33  }
 0x23e   : > { %1326 = vperm.xlu0 %2377, %v1316_v34  }
 0x23f   : > { %1331 = vperm.xlu1 %2378, %v1317_v35  }
 0x240   : > { %2198 = vmatmul.mubr.msk.bf16.vlgmr.msra.gmra.mrb[0].mxu0 %vm1065_vm0, %v2384_v31 }
 0x241   : > { %2201 = vmatprep.mubr.msk.bf16.mxu0 %vm1065_vm0, %v2385_v32 }
 0x242   : > { %1336 = vperm.xlu0 %2377, %v1318_v36  }
 0x243   : > { %1341 = vperm.xlu1 %2378, %v1319_v37  }
 0x246   : > { %1346 = vperm.xlu0 %2377, %v1320_v39  }
 0x247   : > { %1351 = vperm.xlu1 %2378, %v1321_v40   ;;  %v2388_v40 = vld [vmem:[%s3251_s20 + $0x8] sm:$0xff]  }
 0x248   : > { %2202 = vmatmul.mubr.msk.bf16.gmra.mrb[4].mxu0 %vm1065_vm0, %v2386_v38 }
 0x24a   : > { %1356 = vperm.xlu0 %2377, %v1322_v41   ;;  %v2389_v41 = vld [vmem:[%s3251_s20 + $0x10] sm:$0xff]  }
 0x24b   : > { %1361 = vperm.xlu1 %2378, %v1323_v42   ;;  %v2390_v42 = vld [vmem:[%s3251_s20 + $0x18] sm:$0xff]  }
 0x24e   : > { %1494 = vperm.xlu0 %2377, %v2093_v43   ;;  %v2391_v43 = vld [vmem:[%s3251_s20 + $0x20] sm:$0xff]  }
 0x24f   : > { %1499 = vperm.xlu1 %2378, %v2094_v44  }
 0x252   : > { %1504 = vperm.xlu0 %2377, %v2095_v45  }
 0x253   : > { %1509 = vperm.xlu1 %2378, %v2096_v46  }
 0x256   : > { %1514 = vperm.xlu0 %2377, %v2097_v47  }
 0x257   : > { %1519 = vperm.xlu1 %2378, %v2098_v48  }
 0x25a   : > { %1524 = vperm.xlu0 %2377, %v2099_v49  }
 0x25b   : > { %1529 = vperm.xlu1 %2378, %v2100_v50  }
 0x25e   : > { %1651 = vperm.xlu0 %2377, %v1645_v51  }
 0x25f   : > { %1656 = vperm.xlu1 %2378, %v1646_v52  }
 0x262   : > { %1661 = vperm.xlu0 %2377, %v1647_v53  }
 0x263   : > { %1666 = vperm.xlu1 %2378, %v1648_v54  }
 0x266   : > { %1775 = vperm.xlu0 %2377, %v1769_v55  }
 0x267   : > { %1780 = vperm.xlu1 %2378, %v1770_v56  }
 0x26a   : > { %1785 = vperm.xlu0 %2377, %v1771_v57  }
 0x26b   : > { %1790 = vperm.xlu1 %2378, %v1772_v58  }
 0x26e   : > { %1803 = vperm.xlu0 %2377, %v1797_v59  }
 0x26f   : > { %1808 = vperm.xlu1 %2378, %v1798_v60  }
 0x272   : > { %1813 = vperm.xlu0 %2377, %v1799_v61  }
 0x273   : > { %1818 = vperm.xlu1 %2378, %v1800_v62  }
 0x2ac   : > { %v1251_v0 = vpop.permute.xlu0 %1250 }
 0x2ad   : > { %v1261_v1 = vpop.permute.xlu1 %1260 }
 0x2b1   : > { %v1256_v2 = vpop.permute.xlu0 %1255 }
 0x2b2   : > { %v1266_v3 = vpop.permute.xlu1 %1265 }
 0x2b5   : > { %v1271_v7 = vpop.permute.xlu0 %1270 }
 0x2b6   : > { %v1276_v13 = vpop.permute.xlu1 %1275 }
 0x2b9   : > { %v1281_v23 = vpop.permute.xlu0 %1280 }
 0x2ba   : > { %v1286_v28 = vpop.permute.xlu1 %1285 }
 0x2bd   : > { %v1327_v44 = vpop.permute.xlu0 %1326 }
 0x2be   : > { %v1332_v45 = vpop.permute.xlu1 %1331 }
 0x2c1   : > { %v1337_v46 = vpop.permute.xlu0 %1336 }
 0x2c2   : > { %v1342_v47 = vpop.permute.xlu1 %1341 }
 0x2c5   : > { %v1347_v51 = vpop.permute.xlu0 %1346 }
 0x2c6   : > { %v1352_v56 = vpop.permute.xlu1 %1351 }
 0x2c9   : > { %v1357_v63 = vpop.permute.xlu0 %1356 }
 0x313   : > { %v2199_v4 = vpop.f32.mrb[0].mxu0 }
 0x314   : > { %v1290_v5 = vadd.f32 %v2199_v4, %v1261_v1  ;;  %v1209_v6 = vpop.f32.mrb[1].mxu0  ;;  %v1362_v4 = vpop.permute.xlu1 %1361 }
 0x315   : > { %v1288_v8 = vadd.f32 %v1251_v0, %v1209_v6  ;;  %v2200_v9 = vpop.f32.mrb[2].mxu0 }
 0x316   : > { %v1291_v10 = vadd.f32 %v2200_v9, %v1266_v3  ;;  %v1212_v11 = vpop.f32.mrb[3].mxu0  ;;  %v1298_v17 = vmax.f32 %v1290_v5, 0.0 }
 0x317   : > { %v1289_v14 = vadd.f32 %v1256_v2, %v1212_v11  ;;  %v1296_v20 = vmax.f32 %v1288_v8, 0.0 }
 0x318   : > { %v1299_v12 = vmax.f32 %v1291_v10, 0.0 }
 0x319   : > { %v1297_v21 = vmax.f32 %v1289_v14, 0.0 }
 0x31a   : > { %v1313_v22 = vpack.c.bf16 %v1299_v12, %v1298_v17 }
 0x31b   : > { %v2203_v24 = vpop.f32.mrb[4].mxu0  ;;  %v1312_v25 = vpack.c.bf16 %v1297_v21, %v1296_v20  ;;  %v2392_v20 = vld [vmem:[%s3251_s20 + $0x28] sm:$0xff]   ;;  %v2393_v21 = vld [vmem:[%s3251_s20 + $0x30] sm:$0xff]  }
 0x31c   : > { %v1294_v26 = vadd.f32 %v2203_v24, %v1281_v23  ;;  %v1225_v27 = vpop.f32.mrb[5].mxu0  ;;  %v2395_v23 = vld [vmem:[%s3252_s4] sm:$0xff]   ;;  %v1495_v24 = vpop.permute.xlu0 %1494 }
 0x31d   : > { %v1292_v29 = vadd.f32 %v1271_v7, %v1225_v27  ;;  %v2204_v30 = vpop.f32.mrb[6].mxu0  ;;  %2205 = vmatprep.subr.bf16.mxu1 %v1312_v25  ;;  %2245 = vmatprep.mubr.msk.bf16.mxu0 %vm1384_vm1, %v2395_v23 }
 0x31e   : > { %v1295_v31 = vadd.f32 %v2204_v30, %v1286_v28  ;;  %v1228_v32 = vpop.f32.mrb[7].mxu0  ;;  %2206 = vmatpush3.bf16.msra.mxu1 %v1312_v25  ;;  %v1302_v34 = vmax.f32 %v1294_v26, 0.0  ;;  %v1500_v25 = vpop.permute.xlu1 %1499 }
 0x31f   : > { %v1293_v33 = vadd.f32 %v1276_v13, %v1228_v32  ;;  %2207 = vmatprep.subr.bf16.mxu1 %v1313_v22  ;;  %v1300_v36 = vmax.f32 %v1292_v29, 0.0 }
 0x320   : > { %v1303_v35 = vmax.f32 %v1295_v31, 0.0  ;;  %v1505_v26 = vpop.permute.xlu0 %1504 }
 0x321   : > { %v1301_v37 = vmax.f32 %v1293_v33, 0.0 }
 0x322   : > { %v1315_v38 = vpack.c.bf16 %v1303_v35, %v1302_v34  ;;  %2208 = vmatpush3.bf16.msra.mxu1 %v1313_v22  ;;  %v2394_v22 = vld [vmem:[%s3251_s20 + $0x38] sm:$0xff]   ;;  %v1510_v27 = vpop.permute.xlu1 %1509 }
 0x323   : > { %v1314_v39 = vpack.c.bf16 %v1301_v37, %v1300_v36 }
 0x324   : > { %v1515_v31 = vpop.permute.xlu0 %1514 }
 0x325   : > { %2209 = vmatprep.subr.bf16.mxu1 %v1314_v39 }
 0x326   : > { %2210 = vmatpush3.bf16.msra.mxu1 %v1314_v39  ;;  %v1520_v36 = vpop.permute.xlu1 %1519 }
 0x327   : > { %2211 = vmatprep.subr.bf16.mxu1 %v1315_v38 }
 0x32a   : > { %2212 = vmatpush3.bf16.msra.mxu1 %v1315_v38 }
 0x32d   : > { %2214 = vmatmul.mubr.msk.bf16.vlgmr.msra.gmra.mrb[0].mxu1 %vm1384_vm1, %v2388_v40 }
 0x32e   : > { %2217 = vmatprep.mubr.msk.bf16.mxu1 %vm1384_vm1, %v2389_v41 }
 0x335   : > { %2218 = vmatmul.mubr.msk.bf16.gmra.mrb[4].mxu1 %vm1384_vm1, %v2390_v42 }
 0x336   : > { %2229 = vmatprep.mubr.msk.bf16.mxu1 %vm1384_vm1, %v2391_v43  ;;  %v1525_v43 = vpop.permute.xlu0 %1524 }
 0x400   : > { %v2215_v48 = vpop.f32.mrb[0].mxu1 }
 0x401   : > { %v1440_v49 = vadd.f32 %v2215_v48, %v1337_v46  ;;  %v1431_v50 = vpop.f32.mrb[1].mxu1  ;;  %v1530_v48 = vpop.permute.xlu1 %1529 }
 0x402   : > { %v1432_v52 = vadd.f32 %v1431_v50, %v1327_v44  ;;  %v2216_v53 = vpop.f32.mrb[2].mxu1 }
 0x403   : > { %v1443_v54 = vadd.f32 %v2216_v53, %v1342_v47  ;;  %v1434_v55 = vpop.f32.mrb[3].mxu1  ;;  %v1464_v58 = vmax.f32 %v1440_v49, 0.0 }
 0x404   : > { %v1435_v57 = vadd.f32 %v1434_v55, %v1332_v45  ;;  %v1462_v60 = vmax.f32 %v1432_v52, 0.0 }
 0x405   : > { %v1465_v59 = vmax.f32 %v1443_v54, 0.0 }
 0x406   : > { %v1463_v61 = vmax.f32 %v1435_v57, 0.0 }
 0x407   : > { %v1480_v62 = vpack.c.bf16 %v1465_v59, %v1464_v58 }
 0x408   : > { %v1479_v0 = vpack.c.bf16 %v1463_v61, %v1462_v60  ;;  %v2219_v1 = vpop.f32.mrb[4].mxu1  ;;  %v2396_v60 = vld [vmem:[%s3252_s4 + $0x8] sm:$0xff]   ;;  %v1652_v61 = vpop.permute.xlu0 %1651 }
 0x409   : > { %v1456_v2 = vadd.f32 %v2219_v1, %v1357_v63  ;;  %v1447_v3 = vpop.f32.mrb[5].mxu1  ;;  %v1657_v63 = vpop.permute.xlu1 %1656 }
 0x40a   : > { %v1448_v5 = vadd.f32 %v1447_v3, %v1347_v51  ;;  %v2220_v6 = vpop.f32.mrb[6].mxu1  ;;  %2221 = vmatprep.subr.bf16.mxu1 %v1479_v0 }
 0x40b   : > { %v1459_v7 = vadd.f32 %v2220_v6, %v1362_v4  ;;  %v1450_v8 = vpop.f32.mrb[7].mxu1  ;;  %2222 = vmatpush3.bf16.msra.mxu1 %v1479_v0  ;;  %v1468_v10 = vmax.f32 %v1456_v2, 0.0 }
 0x40c   : > { %v1451_v9 = vadd.f32 %v1450_v8, %v1352_v56  ;;  %2223 = vmatprep.subr.bf16.mxu1 %v1480_v62  ;;  %v1466_v13 = vmax.f32 %v1448_v5, 0.0  ;;  %v1662_v5 = vpop.permute.xlu0 %1661 }
 0x40d   : > { %v1469_v11 = vmax.f32 %v1459_v7, 0.0  ;;  %v1667_v8 = vpop.permute.xlu1 %1666 }
 0x40e   : > { %v1467_v14 = vmax.f32 %v1451_v9, 0.0 }
 0x40f   : > { %v1482_v17 = vpack.c.bf16 %v1469_v11, %v1468_v10  ;;  %2224 = vmatpush3.bf16.msra.mxu1 %v1480_v62 }
 0x410   : > { %v1481_v12 = vpack.c.bf16 %v1467_v14, %v1466_v13 }
 0x412   : > { %2225 = vmatprep.subr.bf16.mxu1 %v1481_v12 }
 0x413   : > { %2226 = vmatpush3.bf16.msra.mxu1 %v1481_v12 }
 0x414   : > { %2227 = vmatprep.subr.bf16.mxu1 %v1482_v17 }
 0x417   : > { %2228 = vmatpush3.bf16.msra.mxu1 %v1482_v17 }
 0x41a   : > { %2230 = vmatmul.mubr.msk.bf16.vlgmr.msra.gmra.mrb[8].mxu1 %vm1384_vm1, %v2392_v20 }
 0x41b   : > { %2233 = vmatprep.mubr.msk.bf16.mxu1 %vm1384_vm1, %v2393_v21 }
 0x422   : > { %2234 = vmatmul.mubr.msk.bf16.gmra.mrb[12].mxu1 %vm1384_vm1, %v2394_v22 }
 0x4ed   : > { %v2231_v28 = vpop.f32.mrb[8].mxu1 }
 0x4ee   : > { %v1607_v29 = vadd.f32 %v2231_v28, %v1505_v26  ;;  %v1598_v30 = vpop.f32.mrb[9].mxu1 }
 0x4ef   : > { %v1599_v32 = vadd.f32 %v1598_v30, %v1495_v24  ;;  %v2232_v33 = vpop.f32.mrb[10].mxu1 }
 0x4f0   : > { %v1610_v34 = vadd.f32 %v2232_v33, %v1510_v27  ;;  %v1601_v35 = vpop.f32.mrb[11].mxu1  ;;  %v1631_v38 = vmax.f32 %v1607_v29, 0.0 }
 0x4f1   : > { %v1602_v37 = vadd.f32 %v1601_v35, %v1500_v25  ;;  %v1629_v40 = vmax.f32 %v1599_v32, 0.0 }
 0x4f2   : > { %v1632_v39 = vmax.f32 %v1610_v34, 0.0 }
 0x4f3   : > { %v1630_v41 = vmax.f32 %v1602_v37, 0.0 }
 0x4f4   : > { %v1642_v42 = vpack.c.bf16 %v1632_v39, %v1631_v38 }
 0x4f5   : > { %v1641_v44 = vpack.c.bf16 %v1630_v41, %v1629_v40  ;;  %v2235_v45 = vpop.f32.mrb[12].mxu1  ;;  %v1776_v40 = vpop.permute.xlu0 %1775 }
 0x4f6   : > { %v1623_v46 = vadd.f32 %v2235_v45, %v1525_v43  ;;  %v1614_v47 = vpop.f32.mrb[13].mxu1  ;;  %v1781_v41 = vpop.permute.xlu1 %1780 }
 0x4f7   : > { %v1615_v49 = vadd.f32 %v1614_v47, %v1515_v31  ;;  %v2236_v50 = vpop.f32.mrb[14].mxu1  ;;  %2237 = vmatprep.subr.bf16.mxu0 %v1641_v44 }
 0x4f8   : > { %v1626_v51 = vadd.f32 %v2236_v50, %v1530_v48  ;;  %v1617_v52 = vpop.f32.mrb[15].mxu1  ;;  %2238 = vmatpush3.bf16.msra.mxu0 %v1641_v44  ;;  %v1635_v54 = vmax.f32 %v1623_v46, 0.0  ;;  %v1830_v46 = vlaneseq  ;;  %v1832_v50 = vstv %s2113_s0 }
 0x4f9   : > { %v1618_v53 = vadd.f32 %v1617_v52, %v1520_v36  ;;  %2239 = vmatprep.subr.bf16.mxu0 %v1642_v42  ;;  %v1633_v56 = vmax.f32 %v1615_v49, 0.0  ;;  %v1786_v44 = vpop.permute.xlu0 %1785 }
 0x4fa   : > { %v1636_v55 = vmax.f32 %v1626_v51, 0.0  ;;  %v1791_v45 = vpop.permute.xlu1 %1790  ;;  %v1831_v49 = vand.u32 127, %v1830_v46 }
 0x4fb   : > { %v1634_v57 = vmax.f32 %v1618_v53, 0.0 }
 0x4fc   : > { %v1644_v58 = vpack.c.bf16 %v1636_v55, %v1635_v54  ;;  %2240 = vmatpush3.bf16.msra.mxu0 %v1642_v42 }
 0x4fd   : > { %v1643_v59 = vpack.c.bf16 %v1634_v57, %v1633_v56  ;;  %v1804_v47 = vpop.permute.xlu0 %1803  ;;  %v1833_v56 = vadd.s32 %v1832_v50, %v1831_v49 }
 0x4fe   : > { %v1809_v48 = vpop.permute.xlu1 %1808 }
 0x4ff   : > { %2241 = vmatprep.subr.bf16.mxu0 %v1643_v59  ;;  %vm1834_vm2 = vcmp.lt.s32.totalorder %v1833_v56, 200 }
 0x500   : > { %2242 = vmatpush3.bf16.msra.mxu0 %v1643_v59 }
 0x501   : > { %2243 = vmatprep.subr.bf16.mxu0 %v1644_v58 }
 0x504   : > { %2244 = vmatpush3.bf16.msra.mxu0 %v1644_v58 }
 0x507   : > { %2246 = vmatmul.mubr.msk.bf16.vlgmr.msra.gmra.mrb[8].mxu0 %vm1384_vm1, %v2396_v60 }
 0x5da   : > { %v2247_v62 = vpop.f32.mrb[8].mxu0 }
 0x5db   : > { %v1719_v0 = vpop.f32.mrb[9].mxu0  ;;  %v1728_v6 = vadd.f32 %v2247_v62, %v1662_v5  ;;  %v1819_v62 = vpop.permute.xlu1 %1818 }
 0x5dc   : > { %v2248_v1 = vpop.f32.mrb[10].mxu0  ;;  %v1720_v3 = vadd.f32 %v1719_v0, %v1652_v61  ;;  %v1814_v61 = vpop.permute.xlu0 %1813 }
 0x5dd   : > { %v1722_v2 = vpop.f32.mrb[11].mxu0  ;;  %v1731_v9 = vadd.f32 %v2248_v1, %v1667_v8 }
 0x5de   : > { %v1723_v4 = vadd.f32 %v1722_v2, %v1657_v63 }
 0x5e0   : > { %v1734_v7 = vadd.f32 %v1723_v4, %v1720_v3 }
 0x5e2   : > { %v1735_v10 = vadd.f32 %v1734_v7, %v1728_v6 }
 0x5e4   : > { %v1736_v11 = vadd.f32 %v1735_v10, %v1731_v9 }
 0x5e6   : > { %v1737_v13 = vrot.slane %v1736_v11, 4 }
 0x5e8   : > { %v1738_v14 = vadd.f32 %v1737_v13, %v1736_v11 }
 0x5ea   : > { %v1739_v17 = vrot.slane %v1738_v14, 2 }
 0x5ec   : > { %v1740_v12 = vadd.f32 %v1739_v17, %v1738_v14 }
 0x5ee   : > { %v1741_v20 = vrot.slane %v1740_v12, 1 }
 0x5f0   : > { %v1742_v21 = vadd.f32 %v1741_v20, %v1740_v12 }
 0x5f2   : > { %v1744_v22 = vmul.f32 0.03125, %v1742_v21 }
 0x5f4   : > { %v1745_v23 = vsub.f32 %v1720_v3, %v1744_v22  ;;  %v1746_v24 = vsub.f32 %v1723_v4, %v1744_v22  ;;  %v1747_v25 = vsub.f32 %v1728_v6, %v1744_v22  ;;  %v1748_v26 = vsub.f32 %v1731_v9, %v1744_v22 }
 0x5f6   : > { %v1749_v27 = vmul.f32 %v1745_v23, %v1745_v23  ;;  %v1750_v28 = vmul.f32 %v1746_v24, %v1746_v24  ;;  %v1751_v29 = vmul.f32 %v1747_v25, %v1747_v25  ;;  %v1752_v31 = vmul.f32 %v1748_v26, %v1748_v26 }
 0x5f8   : > { %v1753_v30 = vadd.f32 %v1750_v28, %v1749_v27 }
 0x5fa   : > { %v1754_v32 = vadd.f32 %v1753_v30, %v1751_v29 }
 0x5fc   : > { %v1755_v33 = vadd.f32 %v1754_v32, %v1752_v31 }
 0x5fe   : > { %v1756_v34 = vrot.slane %v1755_v33, 4 }
 0x600   : > { %v1757_v35 = vadd.f32 %v1756_v34, %v1755_v33 }
 0x602   : > { %v1758_v36 = vrot.slane %v1757_v35, 2 }
 0x604   : > { %v1759_v37 = vadd.f32 %v1758_v36, %v1757_v35 }
 0x606   : > { %v1760_v38 = vrot.slane %v1759_v37, 1 }
 0x608   : > { %v1761_v39 = vadd.f32 %v1760_v38, %v1759_v37 }
 0x60a   : > { %v1762_v42 = vmul.f32 0.03125, %v1761_v39 }
 0x60c   : > { %v1763_v43 = vadd.f32 1e-05, %v1762_v42 }
 0x60e   : > { %2397 = vrsqrt.f32 %v1763_v43 }
 0x618   : > { %v2398_v51 = vpop.eup %2397 }
 0x619   : > { %v1765_v52 = vmul.f32 %v2398_v51, %v1745_v23  ;;  %v1766_v53 = vmul.f32 %v2398_v51, %v1746_v24  ;;  %v1767_v54 = vmul.f32 %v2398_v51, %v1747_v25  ;;  %v1768_v55 = vmul.f32 %v2398_v51, %v1748_v26 }
 0x61b   : > { %v1793_v57 = vmul.f32 %v1776_v40, %v1765_v52  ;;  %v1794_v58 = vmul.f32 %v1781_v41, %v1766_v53  ;;  %v1795_v59 = vmul.f32 %v1786_v44, %v1767_v54  ;;  %v1796_v60 = vmul.f32 %v1791_v45, %v1768_v55 }
 0x61d   : > { %v1821_v63 = vadd.f32 %v1804_v47, %v1793_v57  ;;  %v1822_v0 = vadd.f32 %v1809_v48, %v1794_v58  ;;  %v1823_v1 = vadd.f32 %v1814_v61, %v1795_v59  ;;  %v1824_v2 = vadd.f32 %v1819_v62, %v1796_v60 }
 0x61f   : > { %v1825_v3 = vadd.f32 %v1821_v63, %v2918_v15  ;;  %v1826_v4 = vadd.f32 %v1822_v0, %v2921_v16  ;;  %v1827_v5 = vadd.f32 %v1823_v1, %v2927_v18  ;;  %v1828_v6 = vadd.f32 %v1824_v2, %v2930_v19 }
 0x621   : > { %v1837_v7 = vsel %vm1834_vm2, %v1825_v3, 0.0  ;;  %v1838_v8 = vsel %vm1834_vm2, %v1826_v4, 0.0  ;;  %v1839_v9 = vsel %vm1834_vm2, %v1827_v5, 0.0  ;;  %v1840_v10 = vsel %vm1834_vm2, %v1828_v6, 0.0 }
 0x622   : > { %1841 = vst [vmem:[%s2771_s2] sm:$0xff] %v1837_v7  ;;  %1842 = vst [vmem:[%s2771_s2 + $0x8] sm:$0xff] %v1838_v8 }
 0x623   : > { %1843 = vst [vmem:[%s2771_s2 + $0x10] sm:$0xff] %v1839_v9  ;;  %1844 = vst [vmem:[%s2771_s2 + $0x18] sm:$0xff] %v1840_v10 }
 0x624 PF: > { %s2115_s3 = sshll.u32 %s2523_s27, 7  ;;  %s3253_s13 = sld [smem:[#allocation26_spill]] }
 0x625   : > { %s1858_s22 = sshll.u32 %s2771_s2, 4  ;;  %s3254_s8 = sand.u32 1, %s2511_s24   ;;  %s3126_s22 = int_to_ptr.vmem [resolvable:$true] %s1858_s22 }
 0x626   : > { %s3130_s0 = scalar_lea.sflag [#allocation9], %s3254_s8  ;;  %s2423_s4 = scalar_lea.vmem %s3126_s22, 512 }
 0x627   : > { %p2424_p10 = scmp.ne.s32.totalorder %s3126_s22, %s2423_s4  ;;  %s2543_s27 = smov [#allocation8]  }
 0x628   : > { %s2427_s5 = sshll.u32 %s2543_s27, 4  ;;  %s2428_s5 = int_to_ptr.vmem [resolvable:$false] %s2427_s5 }
 0x629   : > { %p2425_p11 = pnand %p2424_p10, %p2713_p5  ;;  %s2429_s18 = scalar_lea.vmem %s2428_s5, 1024 }
 0x62a   : > { %s3123_s19 = scalar_lea.hbm %s3253_s13, %s2115_s3  ;;  %p2430_p13 = scmp.lt.s32.totalorder %s3126_s22, %s2428_s5 }
 0x62b   : > { %p2426_p12 = pneg %p2425_p11  ;;  %p2431_p0 = scmp.lt.s32.totalorder %s2429_s18, %s2423_s4 }
 0x62d   : > { %p2432_p1 = por %p2431_p0, %p2430_p13 }
 0x62f   : > { %p2433_p2 = pnand %p2432_p1, %p2426_p12 }
 0x631   : > { %2436 = shalt.err (!%p2433_p2)
}
 0x632   : > { %s2437_s2 = scalar_lea.hbm %s3123_s19, 512  ;;  %s2441_s8 = scalar_lea.hbm %s3253_s13, 1024 }
 0x633   : > { %p2438_p3 = scmp.ne.s32.totalorder %s3123_s19, %s2437_s2  ;;  %p2442_p7 = scmp.lt.u32.totalorder %s3123_s19, %s3253_s13 }
 0x634   : > { %p2443_p8 = scmp.lt.u32.totalorder %s2441_s8, %s2437_s2  ;;  %p2445_p11 = scmp.lt.u32.totalorder %s2437_s2, %s3123_s19 }
 0x635   : > { %p2439_p4 = pnand %p2438_p3, %p2713_p5 }
 0x636   : > { %p2444_p10 = por %p2443_p8, %p2442_p7 }
 0x637   : > { %p2440_p6 = pneg %p2439_p4 }
 0x638   : > { %p2446_p12 = por %p2445_p11, %p2444_p10 }
 0x63a   : > { %p2447_p13 = pnand %p2446_p12, %p2440_p6 }
 0x63c   : > { %2450 = shalt.err (!%p2447_p13)
}
 0x63d   : > { %s2544_s4 = smov 128   ;;  %s2545_s18 = smov 256  }
 0x63e   : > { %s2546_s6 = smov 8  }
 0x63f   : > { %2273 = dma.vmem_to_hbm [thread:$0]  (%p2713_p5), %s3126_s22, 512, %s3123_s19, %s3130_s0, %s2544_s4, %s2545_s18, %s2546_s6  }
 0x640 PF: > { %p2279_p0 = scmp.ge.s32.totalorder %s2535_s30, 2  ;;  %s1873_s3 = sand.u32 1, %s2499_s1  }
 0x641   : > { %s1874_s2 = scalar_lea.sflag [#allocation9], %s1873_s3 }
 0x642   : > { %p2276_p1 = pnand %p2279_p0, %p2724_p9 }
 0x644   : > { %2494 = dma.done.wait (!%p2276_p1), %s1874_s2, 512  }
 0x645   : > { %2496 = vsyncadd (!%p2276_p1), %s1874_s2, 4294966784  ;;  %s37_s30 = sadd.s32 1, %s2535_s30   ;;  %s3255_s11 = sld [smem:[#allocation13_spill]] }
 0x646   : > { %p34_p2 = scmp.ge.s32.totalorder %s37_s30, 6   ;;  %s3256_s1 = smov %s2511_s24 }
 0x647   : > { %s3257_s22 = smov %s2507_s23  ;;  %s3258_s23 = smov %s2732_s26 }
 0x648   : > { %s3259_s24 = smov %s2515_s25  ;;  %s3260_s25 = smov %s2718_s9 }
 0x649   : > { %s3261_s26 = smov %s2527_s28  ;;  %s3262_s27 = smov %s2531_s29 }
 0x64a   : > { %s3263_s28 = smov %s3266_s17  ;;  %36 = sbr.rel (!%p34_p2) target bundleno = 36 (0x24), region = 209 }
 0x64b   : > { %s3264_s29 = smov %s3255_s11 }
 0x651   :  { %1879 = vsyncpa [#allocation9], 1 }
 0x652   :  { %1881 = vsyncpa [#allocation9 + $0x1], 1 }

</bundles_post_ra>
